<compile_context>
chip_gen: v7x
topology: tpu7x:2x2x1
jax: 0.10.0
libtpu: 0.0.40
codegen_flags: <defaults>
</compile_context>

<pallas_src>
import jax
import jax.numpy as jnp
from jax import lax
from jax.experimental import pallas as pl
from jax.experimental.pallas import tpu as pltpu

# ----------------------------- tiny T5 config -------------------------------
VOCAB = 64
D_MODEL = 32
N_HEADS = 4
D_KV = 8
INNER = N_HEADS * D_KV          # 32
D_FF = 64
N_LAYERS = 2
NUM_BUCKETS = 32
MAX_DISTANCE = 128
EPS = 1e-6
NEG_INF = jnp.finfo(jnp.float32).min


# --------------------------- fused encoder kernel ----------------------------

def _encoder_kernel(*refs):
    """Whole-encoder fused kernel.

    refs = (ids, emb, pos_bias, negmask, final_ln,
            [ln1, wqkv, wo, ln2, wi, wff] * N_LAYERS,
            out_ref, ctx_scratch)
    """
    ids_ref, emb_ref, pos_bias_ref, negmask_ref, final_ln_ref = refs[:5]
    out_ref, ctx = refs[-2], refs[-1]
    layer_refs = refs[5:-2]

    B, _, S = negmask_ref.shape
    H = pos_bias_ref.shape[0]
    BS, inner = ctx.shape
    dk = inner // H
    vocab = emb_ref.shape[0]

    def rms(v, w):
        # T5LayerNorm: RMS only (no mean subtraction, no bias)
        var = jnp.mean(v * v, axis=-1, keepdims=True)
        return v * lax.rsqrt(var + EPS) * w

    # ---- embedding lookup as one-hot @ table (gather-free, runs on MXU) ----
    ids = ids_ref[...]                                            # (B*S, 1) int32
    iota = lax.broadcasted_iota(jnp.int32, (BS, vocab), 1)
    onehot = (iota == ids).astype(jnp.float32)
    x = jnp.dot(onehot, emb_ref[...], preferred_element_type=jnp.float32)  # (B*S, D)

    n_layers = len(layer_refs) // 6
    for l in range(n_layers):
        ln1, wqkv, wo, ln2, wi, wff = layer_refs[6 * l:6 * l + 6]

        # ---- self-attention sub-block (fused QKV matmul) ----
        normed = rms(x, ln1[...])
        qkv = jnp.dot(normed, wqkv[...],
                      preferred_element_type=jnp.float32)        # (B*S, 3*inner)
        for b in range(B):
            maskb = negmask_ref[b]                               # (1, S) additive mask
            r0 = b * S
            for h in range(H):
                q = qkv[r0:r0 + S, h * dk:(h + 1) * dk]
                k = qkv[r0:r0 + S, inner + h * dk:inner + (h + 1) * dk]
                v = qkv[r0:r0 + S, 2 * inner + h * dk:2 * inner + (h + 1) * dk]
                # T5 attention is NOT scaled by 1/sqrt(d_kv)
                s = lax.dot_general(q, k, (((1,), (1,)), ((), ())),
                                    preferred_element_type=jnp.float32)
                s = s + pos_bias_ref[h] + maskb                  # bias + mask in-kernel
                m = jnp.max(s, axis=-1, keepdims=True)
                p = jnp.exp(s - m)
                a = p * pl.reciprocal(jnp.sum(p, axis=-1, keepdims=True), approx=True)
                ctx[pl.ds(r0, S), pl.ds(h * dk, dk)] = jnp.dot(
                    a, v, preferred_element_type=jnp.float32)
        x = x + jnp.dot(ctx[...], wo[...], preferred_element_type=jnp.float32)

        # ---- feed-forward sub-block (DenseReluDense, ReLU) ----
        normed = rms(x, ln2[...])
        hmid = jnp.maximum(
            jnp.dot(normed, wi[...], preferred_element_type=jnp.float32), 0.0)
        x = x + jnp.dot(hmid, wff[...], preferred_element_type=jnp.float32)

    # ---- final T5 layer norm + plain mean over sequence positions ----
    x = rms(x, final_ln_ref[...])
    for b in range(B):
        out_ref[pl.ds(b, 1), :] = jnp.mean(
            x[b * S:(b + 1) * S, :], axis=0, keepdims=True)


def _full_spec(shape):
    nd = len(shape)
    return pl.BlockSpec(shape, lambda i, _nd=nd: (0,) * _nd)


# --------------------------- plain-JAX glue ----------------------------------

def relative_position_bucket(rel_pos, num_buckets=NUM_BUCKETS, max_distance=MAX_DISTANCE):
    # bidirectional (encoder) bucketing, matches HF T5Attention._relative_position_bucket
    num_buckets = num_buckets // 2
    buckets = (rel_pos > 0).astype(jnp.int32) * num_buckets
    rel_pos = jnp.abs(rel_pos)
    max_exact = num_buckets // 2
    is_small = rel_pos < max_exact
    rel_large = max_exact + (
        jnp.log(jnp.maximum(rel_pos, 1).astype(jnp.float32) / max_exact)
        / jnp.log(max_distance / max_exact)
        * (num_buckets - max_exact)
    ).astype(jnp.int32)
    rel_large = jnp.minimum(rel_large, num_buckets - 1)
    return buckets + jnp.where(is_small, rel_pos, rel_large)


def compute_position_bias(rel_bias_table, seq_len):
    ctx = jnp.arange(seq_len)[:, None]            # query positions
    mem = jnp.arange(seq_len)[None, :]            # key positions
    buckets = relative_position_bucket(mem - ctx)           # (S, S)
    bias = rel_bias_table[buckets]                          # (S, S, H)
    return jnp.transpose(bias, (2, 0, 1))                   # (H, S, S)


def t5_encoder_forward(params, input_ids, attention_mask):
    B, S = input_ids.shape

    # Small host-side constants only (bias-table lookup, additive mask, weight
    # concat); everything activation-sized stays inside the single fused kernel.
    pos_bias = compute_position_bias(params["rel_bias"], S)            # (H, S, S)
    negmask = ((1.0 - attention_mask.astype(jnp.float32)) * NEG_INF).reshape(B, 1, S)
    ids = input_ids.reshape(B * S, 1).astype(jnp.int32)

    inputs = [ids, params["embedding"], pos_bias, negmask,
              params["final_ln"].reshape(1, D_MODEL)]
    for layer in params["layers"]:
        wqkv = jnp.concatenate([layer["wq"], layer["wk"], layer["wv"]], axis=1)
        inputs += [layer["ln1"].reshape(1, D_MODEL), wqkv, layer["wo"],
                   layer["ln2"].reshape(1, D_MODEL), layer["wi"], layer["wo_ff"]]

    return pl.pallas_call(
        _encoder_kernel,
        out_shape=jax.ShapeDtypeStruct((B, D_MODEL), jnp.float32),
        grid=(1,),
        in_specs=[_full_spec(a.shape) for a in inputs],
        out_specs=pl.BlockSpec((B, D_MODEL), lambda i: (0, 0)),
        scratch_shapes=[pltpu.VMEM((B * S, INNER), jnp.float32)],
        compiler_params=pltpu.CompilerParams(dimension_semantics=("arbitrary",)),
    )(*inputs)


# ----------------------- pure-JAX reference (for checking) -------------------

def t5_encoder_reference(params, input_ids, attention_mask):
    B, S = input_ids.shape
    x = params["embedding"][input_ids]                                  # (B, S, D)
    pos_bias = compute_position_bias(params["rel_bias"], S)            # (H, S, S)
    ext = (1.0 - attention_mask.astype(jnp.float32))[:, None, None, :] * NEG_INF
    bias = pos_bias[None] + ext                                         # (B, H, S, S)

    def rms(v, w):
        var = jnp.mean(v * v, axis=-1, keepdims=True)
        return v * lax.rsqrt(var + EPS) * w

    for layer in params["layers"]:
        normed = rms(x, layer["ln1"])
        q = (normed @ layer["wq"]).reshape(B, S, N_HEADS, D_KV).transpose(0, 2, 1, 3)
        k = (normed @ layer["wk"]).reshape(B, S, N_HEADS, D_KV).transpose(0, 2, 1, 3)
        v = (normed @ layer["wv"]).reshape(B, S, N_HEADS, D_KV).transpose(0, 2, 1, 3)
        scores = jnp.einsum("bhqd,bhkd->bhqk", q, k) + bias
        attn = jax.nn.softmax(scores, axis=-1)
        ctx = jnp.einsum("bhqk,bhkd->bhqd", attn, v)
        ctx = ctx.transpose(0, 2, 1, 3).reshape(B, S, INNER)
        x = x + ctx @ layer["wo"]
        normed2 = rms(x, layer["ln2"])
        x = x + jnp.maximum(normed2 @ layer["wi"], 0.0) @ layer["wo_ff"]
    x = rms(x, params["final_ln"])
    return jnp.mean(x, axis=1)


# ------------------------------ param init ------------------------------------
# TODO(synk): HF checkpoint loading (T5EncoderModel.from_pretrained) replaced by
# deterministic random init of an architecturally identical tiny T5 encoder.

def init_params(key):
    ks = jax.random.split(key, 3 + 8 * N_LAYERS)
    scale = 0.05
    params = {
        "embedding": jax.random.normal(ks[0], (VOCAB, D_MODEL), jnp.float32) * scale,
        "rel_bias": jax.random.normal(ks[1], (NUM_BUCKETS, N_HEADS), jnp.float32) * scale,
        "final_ln": jnp.ones((D_MODEL,), jnp.float32),
        "layers": [],
    }
    idx = 3
    for _ in range(N_LAYERS):
        layer = {
            "ln1": jnp.ones((D_MODEL,), jnp.float32),
            "wq": jax.random.normal(ks[idx + 0], (D_MODEL, INNER), jnp.float32) * scale,
            "wk": jax.random.normal(ks[idx + 1], (D_MODEL, INNER), jnp.float32) * scale,
            "wv": jax.random.normal(ks[idx + 2], (D_MODEL, INNER), jnp.float32) * scale,
            "wo": jax.random.normal(ks[idx + 3], (INNER, D_MODEL), jnp.float32) * scale,
            "ln2": jnp.ones((D_MODEL,), jnp.float32),
            "wi": jax.random.normal(ks[idx + 4], (D_MODEL, D_FF), jnp.float32) * scale,
            "wo_ff": jax.random.normal(ks[idx + 5], (D_FF, D_MODEL), jnp.float32) * scale,
        }
        params["layers"].append(layer)
        idx += 8
    return params


# --------------------------------- main ---------------------------------------

if __name__ == "__main__":
    key = jax.random.PRNGKey(0)
    pkey, ikey = jax.random.split(key)

    params = init_params(pkey)

    B, S = 2, 8
    input_ids = jax.random.randint(ikey, (B, S), 0, VOCAB, dtype=jnp.int32)
    attention_mask = jnp.ones((B, S), jnp.int32).at[1, 6:].set(0)   # pad tail of batch 1

    fwd = jax.jit(t5_encoder_forward)
    pooled = jax.block_until_ready(fwd(params, input_ids, attention_mask))

    assert pooled.shape == (B, D_MODEL)
    assert bool(jnp.all(jnp.isfinite(pooled)))

    ref = t5_encoder_reference(params, input_ids, attention_mask)
    assert bool(jnp.allclose(pooled, ref, atol=5e-3, rtol=5e-2)), (
        "max abs diff vs reference: %e" % float(jnp.max(jnp.abs(pooled - ref))))

    print("KERNEL_OK")
</pallas_src>

<mosaic_0001>
module attributes {stable_mosaic.version = 11 : i64} {
  func.func @_encoder_kernel(%arg0: i32, %arg1: memref<16x1xi32, #tpu.memory_space<vmem>>, %arg2: memref<64x32xf32, #tpu.memory_space<vmem>>, %arg3: memref<4x8x8xf32, #tpu.memory_space<vmem>>, %arg4: memref<2x1x8xf32, #tpu.memory_space<vmem>>, %arg5: memref<1x32xf32, #tpu.memory_space<vmem>>, %arg6: memref<1x32xf32, #tpu.memory_space<vmem>>, %arg7: memref<32x96xf32, #tpu.memory_space<vmem>>, %arg8: memref<32x32xf32, #tpu.memory_space<vmem>>, %arg9: memref<1x32xf32, #tpu.memory_space<vmem>>, %arg10: memref<32x64xf32, #tpu.memory_space<vmem>>, %arg11: memref<64x32xf32, #tpu.memory_space<vmem>>, %arg12: memref<1x32xf32, #tpu.memory_space<vmem>>, %arg13: memref<32x96xf32, #tpu.memory_space<vmem>>, %arg14: memref<32x32xf32, #tpu.memory_space<vmem>>, %arg15: memref<1x32xf32, #tpu.memory_space<vmem>>, %arg16: memref<32x64xf32, #tpu.memory_space<vmem>>, %arg17: memref<64x32xf32, #tpu.memory_space<vmem>>, %arg18: memref<2x32xf32, #tpu.memory_space<vmem>>, %arg19: memref<16x32xf32, #tpu.memory_space<vmem>>) attributes {dimension_semantics = [#tpu.dimension_semantics<arbitrary>], iteration_bounds = array<i64: 1>, scalar_prefetch = 0 : i64, scratch_operands = 1 : i64, tpu.core_type = #tpu.core_type<tc>, window_params = [{pipeline_mode = #tpu.pipeline_mode<synchronous>, transform_indices = @transform_0, window_bounds = array<i64: 16, 1>}, {pipeline_mode = #tpu.pipeline_mode<synchronous>, transform_indices = @transform_1, window_bounds = array<i64: 64, 32>}, {pipeline_mode = #tpu.pipeline_mode<synchronous>, transform_indices = @transform_2, window_bounds = array<i64: 4, 8, 8>}, {pipeline_mode = #tpu.pipeline_mode<synchronous>, transform_indices = @transform_3, window_bounds = array<i64: 2, 1, 8>}, {pipeline_mode = #tpu.pipeline_mode<synchronous>, transform_indices = @transform_4, window_bounds = array<i64: 1, 32>}, {pipeline_mode = #tpu.pipeline_mode<synchronous>, transform_indices = @transform_5, window_bounds = array<i64: 1, 32>}, {pipeline_mode = #tpu.pipeline_mode<synchronous>, transform_indices = @transform_6, window_bounds = array<i64: 32, 96>}, {pipeline_mode = #tpu.pipeline_mode<synchronous>, transform_indices = @transform_7, window_bounds = array<i64: 32, 32>}, {pipeline_mode = #tpu.pipeline_mode<synchronous>, transform_indices = @transform_8, window_bounds = array<i64: 1, 32>}, {pipeline_mode = #tpu.pipeline_mode<synchronous>, transform_indices = @transform_9, window_bounds = array<i64: 32, 64>}, {pipeline_mode = #tpu.pipeline_mode<synchronous>, transform_indices = @transform_10, window_bounds = array<i64: 64, 32>}, {pipeline_mode = #tpu.pipeline_mode<synchronous>, transform_indices = @transform_11, window_bounds = array<i64: 1, 32>}, {pipeline_mode = #tpu.pipeline_mode<synchronous>, transform_indices = @transform_12, window_bounds = array<i64: 32, 96>}, {pipeline_mode = #tpu.pipeline_mode<synchronous>, transform_indices = @transform_13, window_bounds = array<i64: 32, 32>}, {pipeline_mode = #tpu.pipeline_mode<synchronous>, transform_indices = @transform_14, window_bounds = array<i64: 1, 32>}, {pipeline_mode = #tpu.pipeline_mode<synchronous>, transform_indices = @transform_15, window_bounds = array<i64: 32, 64>}, {pipeline_mode = #tpu.pipeline_mode<synchronous>, transform_indices = @transform_16, window_bounds = array<i64: 64, 32>}, {pipeline_mode = #tpu.pipeline_mode<synchronous>, transform_indices = @transform_17, window_bounds = array<i64: 2, 32>}]} {
    %c0 = arith.constant 0 : index
    %c0_0 = arith.constant 0 : index
    %0 = vector.load %arg1[%c0, %c0_0] : memref<16x1xi32, #tpu.memory_space<vmem>>, vector<16x1xi32>
    %1 = tpu.iota {dimensions = array<i32: 1>} : vector<16x64xi32>
    %2 = vector.broadcast %0 : vector<16x1xi32> to vector<16x64xi32>
    %3 = arith.cmpi eq, %1, %2 : vector<16x64xi32>
    %4 = arith.extui %3 : vector<16x64xi1> to vector<16x64xi32>
    %5 = arith.sitofp %4 : vector<16x64xi32> to vector<16x64xf32>
    %c0_1 = arith.constant 0 : index
    %c0_2 = arith.constant 0 : index
    %6 = vector.load %arg2[%c0_1, %c0_2] : memref<64x32xf32, #tpu.memory_space<vmem>>, vector<64x32xf32>
    %cst = arith.constant dense<0.000000e+00> : vector<16x32xf32>
    %7 = tpu.matmul %5, %6, %cst {dimension_numbers = #tpu.dot_dimension_numbers<[1], [0], [0], [1], [0, 0, 1, 1], [], []>} : vector<16x64xf32>, vector<64x32xf32>, vector<16x32xf32> -> vector<16x32xf32>
    %c0_3 = arith.constant 0 : index
    %c0_4 = arith.constant 0 : index
    %8 = vector.load %arg6[%c0_3, %c0_4] : memref<1x32xf32, #tpu.memory_space<vmem>>, vector<1x32xf32>
    %9 = arith.mulf %7, %7 : vector<16x32xf32>
    %cst_5 = arith.constant dense<0.000000e+00> : vector<16xf32>
    %10 = vector.multi_reduction <add>, %9, %cst_5 [1] : vector<16x32xf32> to vector<16xf32>
    %11 = vector.shape_cast %10 : vector<16xf32> to vector<16x1xf32>
    %cst_6 = arith.constant 3.200000e+01 : f32
    %12 = vector.broadcast %cst_6 : f32 to vector<16x1xf32>
    %13 = arith.divf %11, %12 : vector<16x1xf32>
    %cst_7 = arith.constant 9.99999997E-7 : f32
    %14 = vector.broadcast %cst_7 : f32 to vector<16x1xf32>
    %15 = arith.addf %13, %14 : vector<16x1xf32>
    %16 = math.rsqrt %15 : vector<16x1xf32>
    %17 = vector.broadcast %16 : vector<16x1xf32> to vector<16x32xf32>
    %18 = arith.mulf %7, %17 : vector<16x32xf32>
    %19 = vector.broadcast %8 : vector<1x32xf32> to vector<16x32xf32>
    %20 = arith.mulf %18, %19 : vector<16x32xf32>
    %c0_8 = arith.constant 0 : index
    %c0_9 = arith.constant 0 : index
    %21 = vector.load %arg7[%c0_8, %c0_9] : memref<32x96xf32, #tpu.memory_space<vmem>>, vector<32x96xf32>
    %cst_10 = arith.constant dense<0.000000e+00> : vector<16x96xf32>
    %22 = tpu.matmul %20, %21, %cst_10 {dimension_numbers = #tpu.dot_dimension_numbers<[1], [0], [0], [1], [0, 0, 1, 1], [], []>} : vector<16x32xf32>, vector<32x96xf32>, vector<16x96xf32> -> vector<16x96xf32>
    %c0_11 = arith.constant 0 : index
    %c0_12 = arith.constant 0 : index
    %c0_13 = arith.constant 0 : index
    %23 = vector.load %arg4[%c0_11, %c0_12, %c0_13] : memref<2x1x8xf32, #tpu.memory_space<vmem>>, vector<1x1x8xf32>
    %24 = vector.shape_cast %23 : vector<1x1x8xf32> to vector<1x8xf32>
    %25 = vector.extract_strided_slice %22 {offsets = [0, 0], sizes = [8, 8], strides = [1, 1]} : vector<16x96xf32> to vector<8x8xf32>
    %26 = vector.extract_strided_slice %22 {offsets = [0, 32], sizes = [8, 8], strides = [1, 1]} : vector<16x96xf32> to vector<8x8xf32>
    %27 = vector.extract_strided_slice %22 {offsets = [0, 64], sizes = [8, 8], strides = [1, 1]} : vector<16x96xf32> to vector<8x8xf32>
    %cst_14 = arith.constant dense<0.000000e+00> : vector<8x8xf32>
    %28 = tpu.matmul %25, %26, %cst_14 {dimension_numbers = #tpu.dot_dimension_numbers<[1], [1], [0], [0], [0, 0, 1, 0], [], []>} : vector<8x8xf32>, vector<8x8xf32>, vector<8x8xf32> -> vector<8x8xf32>
    %c0_15 = arith.constant 0 : index
    %c0_16 = arith.constant 0 : index
    %c0_17 = arith.constant 0 : index
    %29 = vector.load %arg3[%c0_15, %c0_16, %c0_17] : memref<4x8x8xf32, #tpu.memory_space<vmem>>, vector<1x8x8xf32>
    %30 = vector.shape_cast %29 : vector<1x8x8xf32> to vector<8x8xf32>
    %31 = arith.addf %28, %30 : vector<8x8xf32>
    %32 = vector.broadcast %24 : vector<1x8xf32> to vector<8x8xf32>
    %33 = arith.addf %31, %32 : vector<8x8xf32>
    %cst_18 = arith.constant dense<0xFF800000> : vector<8xf32>
    %34 = vector.multi_reduction <maximumf>, %33, %cst_18 [1] : vector<8x8xf32> to vector<8xf32>
    %35 = vector.shape_cast %34 : vector<8xf32> to vector<8x1xf32>
    %36 = vector.broadcast %35 : vector<8x1xf32> to vector<8x8xf32>
    %37 = arith.subf %33, %36 : vector<8x8xf32>
    %38 = math.exp %37 : vector<8x8xf32>
    %cst_19 = arith.constant dense<0.000000e+00> : vector<8xf32>
    %39 = vector.multi_reduction <add>, %38, %cst_19 [1] : vector<8x8xf32> to vector<8xf32>
    %40 = vector.shape_cast %39 : vector<8xf32> to vector<8x1xf32>
    %41 = tpu.reciprocal %40 {approx = true} : vector<8x1xf32> -> vector<8x1xf32>
    %42 = vector.broadcast %41 : vector<8x1xf32> to vector<8x8xf32>
    %43 = arith.mulf %38, %42 : vector<8x8xf32>
    %cst_20 = arith.constant dense<0.000000e+00> : vector<8x8xf32>
    %44 = tpu.matmul %43, %27, %cst_20 {dimension_numbers = #tpu.dot_dimension_numbers<[1], [0], [0], [1], [0, 0, 1, 1], [], []>} : vector<8x8xf32>, vector<8x8xf32>, vector<8x8xf32> -> vector<8x8xf32>
    %c0_21 = arith.constant 0 : index
    %c0_22 = arith.constant 0 : index
    %45 = vector.load %arg19[%c0_21, %c0_22] : memref<16x32xf32, #tpu.memory_space<vmem>>, vector<8x8xf32>
    tpu.vector_store %arg19[%c0_21, %c0_22], %44 {strides = array<i32>} : memref<16x32xf32, #tpu.memory_space<vmem>>, vector<8x8xf32>,
    %46 = vector.extract_strided_slice %22 {offsets = [0, 8], sizes = [8, 8], strides = [1, 1]} : vector<16x96xf32> to vector<8x8xf32>
    %47 = vector.extract_strided_slice %22 {offsets = [0, 40], sizes = [8, 8], strides = [1, 1]} : vector<16x96xf32> to vector<8x8xf32>
    %48 = vector.extract_strided_slice %22 {offsets = [0, 72], sizes = [8, 8], strides = [1, 1]} : vector<16x96xf32> to vector<8x8xf32>
    %cst_23 = arith.constant dense<0.000000e+00> : vector<8x8xf32>
    %49 = tpu.matmul %46, %47, %cst_23 {dimension_numbers = #tpu.dot_dimension_numbers<[1], [1], [0], [0], [0, 0, 1, 0], [], []>} : vector<8x8xf32>, vector<8x8xf32>, vector<8x8xf32> -> vector<8x8xf32>
    %c1 = arith.constant 1 : index
    %c0_24 = arith.constant 0 : index
    %c0_25 = arith.constant 0 : index
    %50 = vector.load %arg3[%c1, %c0_24, %c0_25] : memref<4x8x8xf32, #tpu.memory_space<vmem>>, vector<1x8x8xf32>
    %51 = vector.shape_cast %50 : vector<1x8x8xf32> to vector<8x8xf32>
    %52 = arith.addf %49, %51 : vector<8x8xf32>
    %53 = vector.broadcast %24 : vector<1x8xf32> to vector<8x8xf32>
    %54 = arith.addf %52, %53 : vector<8x8xf32>
    %cst_26 = arith.constant dense<0xFF800000> : vector<8xf32>
    %55 = vector.multi_reduction <maximumf>, %54, %cst_26 [1] : vector<8x8xf32> to vector<8xf32>
    %56 = vector.shape_cast %55 : vector<8xf32> to vector<8x1xf32>
    %57 = vector.broadcast %56 : vector<8x1xf32> to vector<8x8xf32>
    %58 = arith.subf %54, %57 : vector<8x8xf32>
    %59 = math.exp %58 : vector<8x8xf32>
    %cst_27 = arith.constant dense<0.000000e+00> : vector<8xf32>
    %60 = vector.multi_reduction <add>, %59, %cst_27 [1] : vector<8x8xf32> to vector<8xf32>
    %61 = vector.shape_cast %60 : vector<8xf32> to vector<8x1xf32>
    %62 = tpu.reciprocal %61 {approx = true} : vector<8x1xf32> -> vector<8x1xf32>
    %63 = vector.broadcast %62 : vector<8x1xf32> to vector<8x8xf32>
    %64 = arith.mulf %59, %63 : vector<8x8xf32>
    %cst_28 = arith.constant dense<0.000000e+00> : vector<8x8xf32>
    %65 = tpu.matmul %64, %48, %cst_28 {dimension_numbers = #tpu.dot_dimension_numbers<[1], [0], [0], [1], [0, 0, 1, 1], [], []>} : vector<8x8xf32>, vector<8x8xf32>, vector<8x8xf32> -> vector<8x8xf32>
    %c0_29 = arith.constant 0 : index
    %c8 = arith.constant 8 : index
    %66 = vector.load %arg19[%c0_29, %c8] : memref<16x32xf32, #tpu.memory_space<vmem>>, vector<8x8xf32>
    tpu.vector_store %arg19[%c0_29, %c8], %65 {strides = array<i32>} : memref<16x32xf32, #tpu.memory_space<vmem>>, vector<8x8xf32>,
    %67 = vector.extract_strided_slice %22 {offsets = [0, 16], sizes = [8, 8], strides = [1, 1]} : vector<16x96xf32> to vector<8x8xf32>
    %68 = vector.extract_strided_slice %22 {offsets = [0, 48], sizes = [8, 8], strides = [1, 1]} : vector<16x96xf32> to vector<8x8xf32>
    %69 = vector.extract_strided_slice %22 {offsets = [0, 80], sizes = [8, 8], strides = [1, 1]} : vector<16x96xf32> to vector<8x8xf32>
    %cst_30 = arith.constant dense<0.000000e+00> : vector<8x8xf32>
    %70 = tpu.matmul %67, %68, %cst_30 {dimension_numbers = #tpu.dot_dimension_numbers<[1], [1], [0], [0], [0, 0, 1, 0], [], []>} : vector<8x8xf32>, vector<8x8xf32>, vector<8x8xf32> -> vector<8x8xf32>
    %c2 = arith.constant 2 : index
    %c0_31 = arith.constant 0 : index
    %c0_32 = arith.constant 0 : index
    %71 = vector.load %arg3[%c2, %c0_31, %c0_32] : memref<4x8x8xf32, #tpu.memory_space<vmem>>, vector<1x8x8xf32>
    %72 = vector.shape_cast %71 : vector<1x8x8xf32> to vector<8x8xf32>
    %73 = arith.addf %70, %72 : vector<8x8xf32>
    %74 = vector.broadcast %24 : vector<1x8xf32> to vector<8x8xf32>
    %75 = arith.addf %73, %74 : vector<8x8xf32>
    %cst_33 = arith.constant dense<0xFF800000> : vector<8xf32>
    %76 = vector.multi_reduction <maximumf>, %75, %cst_33 [1] : vector<8x8xf32> to vector<8xf32>
    %77 = vector.shape_cast %76 : vector<8xf32> to vector<8x1xf32>
    %78 = vector.broadcast %77 : vector<8x1xf32> to vector<8x8xf32>
    %79 = arith.subf %75, %78 : vector<8x8xf32>
    %80 = math.exp %79 : vector<8x8xf32>
    %cst_34 = arith.constant dense<0.000000e+00> : vector<8xf32>
    %81 = vector.multi_reduction <add>, %80, %cst_34 [1] : vector<8x8xf32> to vector<8xf32>
    %82 = vector.shape_cast %81 : vector<8xf32> to vector<8x1xf32>
    %83 = tpu.reciprocal %82 {approx = true} : vector<8x1xf32> -> vector<8x1xf32>
    %84 = vector.broadcast %83 : vector<8x1xf32> to vector<8x8xf32>
    %85 = arith.mulf %80, %84 : vector<8x8xf32>
    %cst_35 = arith.constant dense<0.000000e+00> : vector<8x8xf32>
    %86 = tpu.matmul %85, %69, %cst_35 {dimension_numbers = #tpu.dot_dimension_numbers<[1], [0], [0], [1], [0, 0, 1, 1], [], []>} : vector<8x8xf32>, vector<8x8xf32>, vector<8x8xf32> -> vector<8x8xf32>
    %c0_36 = arith.constant 0 : index
    %c16 = arith.constant 16 : index
    %87 = vector.load %arg19[%c0_36, %c16] : memref<16x32xf32, #tpu.memory_space<vmem>>, vector<8x8xf32>
    tpu.vector_store %arg19[%c0_36, %c16], %86 {strides = array<i32>} : memref<16x32xf32, #tpu.memory_space<vmem>>, vector<8x8xf32>,
    %88 = vector.extract_strided_slice %22 {offsets = [0, 24], sizes = [8, 8], strides = [1, 1]} : vector<16x96xf32> to vector<8x8xf32>
    %89 = vector.extract_strided_slice %22 {offsets = [0, 56], sizes = [8, 8], strides = [1, 1]} : vector<16x96xf32> to vector<8x8xf32>
    %90 = vector.extract_strided_slice %22 {offsets = [0, 88], sizes = [8, 8], strides = [1, 1]} : vector<16x96xf32> to vector<8x8xf32>
    %cst_37 = arith.constant dense<0.000000e+00> : vector<8x8xf32>
    %91 = tpu.matmul %88, %89, %cst_37 {dimension_numbers = #tpu.dot_dimension_numbers<[1], [1], [0], [0], [0, 0, 1, 0], [], []>} : vector<8x8xf32>, vector<8x8xf32>, vector<8x8xf32> -> vector<8x8xf32>
    %c3 = arith.constant 3 : index
    %c0_38 = arith.constant 0 : index
    %c0_39 = arith.constant 0 : index
    %92 = vector.load %arg3[%c3, %c0_38, %c0_39] : memref<4x8x8xf32, #tpu.memory_space<vmem>>, vector<1x8x8xf32>
    %93 = vector.shape_cast %92 : vector<1x8x8xf32> to vector<8x8xf32>
    %94 = arith.addf %91, %93 : vector<8x8xf32>
    %95 = vector.broadcast %24 : vector<1x8xf32> to vector<8x8xf32>
    %96 = arith.addf %94, %95 : vector<8x8xf32>
    %cst_40 = arith.constant dense<0xFF800000> : vector<8xf32>
    %97 = vector.multi_reduction <maximumf>, %96, %cst_40 [1] : vector<8x8xf32> to vector<8xf32>
    %98 = vector.shape_cast %97 : vector<8xf32> to vector<8x1xf32>
    %99 = vector.broadcast %98 : vector<8x1xf32> to vector<8x8xf32>
    %100 = arith.subf %96, %99 : vector<8x8xf32>
    %101 = math.exp %100 : vector<8x8xf32>
    %cst_41 = arith.constant dense<0.000000e+00> : vector<8xf32>
    %102 = vector.multi_reduction <add>, %101, %cst_41 [1] : vector<8x8xf32> to vector<8xf32>
    %103 = vector.shape_cast %102 : vector<8xf32> to vector<8x1xf32>
    %104 = tpu.reciprocal %103 {approx = true} : vector<8x1xf32> -> vector<8x1xf32>
    %105 = vector.broadcast %104 : vector<8x1xf32> to vector<8x8xf32>
    %106 = arith.mulf %101, %105 : vector<8x8xf32>
    %cst_42 = arith.constant dense<0.000000e+00> : vector<8x8xf32>
    %107 = tpu.matmul %106, %90, %cst_42 {dimension_numbers = #tpu.dot_dimension_numbers<[1], [0], [0], [1], [0, 0, 1, 1], [], []>} : vector<8x8xf32>, vector<8x8xf32>, vector<8x8xf32> -> vector<8x8xf32>
    %c0_43 = arith.constant 0 : index
    %c24 = arith.constant 24 : index
    %108 = vector.load %arg19[%c0_43, %c24] : memref<16x32xf32, #tpu.memory_space<vmem>>, vector<8x8xf32>
    tpu.vector_store %arg19[%c0_43, %c24], %107 {strides = array<i32>} : memref<16x32xf32, #tpu.memory_space<vmem>>, vector<8x8xf32>,
    %c1_44 = arith.constant 1 : index
    %c0_45 = arith.constant 0 : index
    %c0_46 = arith.constant 0 : index
    %109 = vector.load %arg4[%c1_44, %c0_45, %c0_46] : memref<2x1x8xf32, #tpu.memory_space<vmem>>, vector<1x1x8xf32>
    %110 = vector.shape_cast %109 : vector<1x1x8xf32> to vector<1x8xf32>
    %111 = vector.extract_strided_slice %22 {offsets = [8, 0], sizes = [8, 8], strides = [1, 1]} : vector<16x96xf32> to vector<8x8xf32>
    %112 = vector.extract_strided_slice %22 {offsets = [8, 32], sizes = [8, 8], strides = [1, 1]} : vector<16x96xf32> to vector<8x8xf32>
    %113 = vector.extract_strided_slice %22 {offsets = [8, 64], sizes = [8, 8], strides = [1, 1]} : vector<16x96xf32> to vector<8x8xf32>
    %cst_47 = arith.constant dense<0.000000e+00> : vector<8x8xf32>
    %114 = tpu.matmul %111, %112, %cst_47 {dimension_numbers = #tpu.dot_dimension_numbers<[1], [1], [0], [0], [0, 0, 1, 0], [], []>} : vector<8x8xf32>, vector<8x8xf32>, vector<8x8xf32> -> vector<8x8xf32>
    %c0_48 = arith.constant 0 : index
    %c0_49 = arith.constant 0 : index
    %c0_50 = arith.constant 0 : index
    %115 = vector.load %arg3[%c0_48, %c0_49, %c0_50] : memref<4x8x8xf32, #tpu.memory_space<vmem>>, vector<1x8x8xf32>
    %116 = vector.shape_cast %115 : vector<1x8x8xf32> to vector<8x8xf32>
    %117 = arith.addf %114, %116 : vector<8x8xf32>
    %118 = vector.broadcast %110 : vector<1x8xf32> to vector<8x8xf32>
    %119 = arith.addf %117, %118 : vector<8x8xf32>
    %cst_51 = arith.constant dense<0xFF800000> : vector<8xf32>
    %120 = vector.multi_reduction <maximumf>, %119, %cst_51 [1] : vector<8x8xf32> to vector<8xf32>
    %121 = vector.shape_cast %120 : vector<8xf32> to vector<8x1xf32>
    %122 = vector.broadcast %121 : vector<8x1xf32> to vector<8x8xf32>
    %123 = arith.subf %119, %122 : vector<8x8xf32>
    %124 = math.exp %123 : vector<8x8xf32>
    %cst_52 = arith.constant dense<0.000000e+00> : vector<8xf32>
    %125 = vector.multi_reduction <add>, %124, %cst_52 [1] : vector<8x8xf32> to vector<8xf32>
    %126 = vector.shape_cast %125 : vector<8xf32> to vector<8x1xf32>
    %127 = tpu.reciprocal %126 {approx = true} : vector<8x1xf32> -> vector<8x1xf32>
    %128 = vector.broadcast %127 : vector<8x1xf32> to vector<8x8xf32>
    %129 = arith.mulf %124, %128 : vector<8x8xf32>
    %cst_53 = arith.constant dense<0.000000e+00> : vector<8x8xf32>
    %130 = tpu.matmul %129, %113, %cst_53 {dimension_numbers = #tpu.dot_dimension_numbers<[1], [0], [0], [1], [0, 0, 1, 1], [], []>} : vector<8x8xf32>, vector<8x8xf32>, vector<8x8xf32> -> vector<8x8xf32>
    %c8_54 = arith.constant 8 : index
    %c0_55 = arith.constant 0 : index
    %131 = vector.load %arg19[%c8_54, %c0_55] : memref<16x32xf32, #tpu.memory_space<vmem>>, vector<8x8xf32>
    tpu.vector_store %arg19[%c8_54, %c0_55], %130 {strides = array<i32>} : memref<16x32xf32, #tpu.memory_space<vmem>>, vector<8x8xf32>,
    %132 = vector.extract_strided_slice %22 {offsets = [8, 8], sizes = [8, 8], strides = [1, 1]} : vector<16x96xf32> to vector<8x8xf32>
    %133 = vector.extract_strided_slice %22 {offsets = [8, 40], sizes = [8, 8], strides = [1, 1]} : vector<16x96xf32> to vector<8x8xf32>
    %134 = vector.extract_strided_slice %22 {offsets = [8, 72], sizes = [8, 8], strides = [1, 1]} : vector<16x96xf32> to vector<8x8xf32>
    %cst_56 = arith.constant dense<0.000000e+00> : vector<8x8xf32>
    %135 = tpu.matmul %132, %133, %cst_56 {dimension_numbers = #tpu.dot_dimension_numbers<[1], [1], [0], [0], [0, 0, 1, 0], [], []>} : vector<8x8xf32>, vector<8x8xf32>, vector<8x8xf32> -> vector<8x8xf32>
    %c1_57 = arith.constant 1 : index
    %c0_58 = arith.constant 0 : index
    %c0_59 = arith.constant 0 : index
    %136 = vector.load %arg3[%c1_57, %c0_58, %c0_59] : memref<4x8x8xf32, #tpu.memory_space<vmem>>, vector<1x8x8xf32>
    %137 = vector.shape_cast %136 : vector<1x8x8xf32> to vector<8x8xf32>
    %138 = arith.addf %135, %137 : vector<8x8xf32>
    %139 = vector.broadcast %110 : vector<1x8xf32> to vector<8x8xf32>
    %140 = arith.addf %138, %139 : vector<8x8xf32>
    %cst_60 = arith.constant dense<0xFF800000> : vector<8xf32>
    %141 = vector.multi_reduction <maximumf>, %140, %cst_60 [1] : vector<8x8xf32> to vector<8xf32>
    %142 = vector.shape_cast %141 : vector<8xf32> to vector<8x1xf32>
    %143 = vector.broadcast %142 : vector<8x1xf32> to vector<8x8xf32>
    %144 = arith.subf %140, %143 : vector<8x8xf32>
    %145 = math.exp %144 : vector<8x8xf32>
    %cst_61 = arith.constant dense<0.000000e+00> : vector<8xf32>
    %146 = vector.multi_reduction <add>, %145, %cst_61 [1] : vector<8x8xf32> to vector<8xf32>
    %147 = vector.shape_cast %146 : vector<8xf32> to vector<8x1xf32>
    %148 = tpu.reciprocal %147 {approx = true} : vector<8x1xf32> -> vector<8x1xf32>
    %149 = vector.broadcast %148 : vector<8x1xf32> to vector<8x8xf32>
    %150 = arith.mulf %145, %149 : vector<8x8xf32>
    %cst_62 = arith.constant dense<0.000000e+00> : vector<8x8xf32>
    %151 = tpu.matmul %150, %134, %cst_62 {dimension_numbers = #tpu.dot_dimension_numbers<[1], [0], [0], [1], [0, 0, 1, 1], [], []>} : vector<8x8xf32>, vector<8x8xf32>, vector<8x8xf32> -> vector<8x8xf32>
    %c8_63 = arith.constant 8 : index
    %c8_64 = arith.constant 8 : index
    %152 = vector.load %arg19[%c8_63, %c8_64] : memref<16x32xf32, #tpu.memory_space<vmem>>, vector<8x8xf32>
    tpu.vector_store %arg19[%c8_63, %c8_64], %151 {strides = array<i32>} : memref<16x32xf32, #tpu.memory_space<vmem>>, vector<8x8xf32>,
    %153 = vector.extract_strided_slice %22 {offsets = [8, 16], sizes = [8, 8], strides = [1, 1]} : vector<16x96xf32> to vector<8x8xf32>
    %154 = vector.extract_strided_slice %22 {offsets = [8, 48], sizes = [8, 8], strides = [1, 1]} : vector<16x96xf32> to vector<8x8xf32>
    %155 = vector.extract_strided_slice %22 {offsets = [8, 80], sizes = [8, 8], strides = [1, 1]} : vector<16x96xf32> to vector<8x8xf32>
    %cst_65 = arith.constant dense<0.000000e+00> : vector<8x8xf32>
    %156 = tpu.matmul %153, %154, %cst_65 {dimension_numbers = #tpu.dot_dimension_numbers<[1], [1], [0], [0], [0, 0, 1, 0], [], []>} : vector<8x8xf32>, vector<8x8xf32>, vector<8x8xf32> -> vector<8x8xf32>
    %c2_66 = arith.constant 2 : index
    %c0_67 = arith.constant 0 : index
    %c0_68 = arith.constant 0 : index
    %157 = vector.load %arg3[%c2_66, %c0_67, %c0_68] : memref<4x8x8xf32, #tpu.memory_space<vmem>>, vector<1x8x8xf32>
    %158 = vector.shape_cast %157 : vector<1x8x8xf32> to vector<8x8xf32>
    %159 = arith.addf %156, %158 : vector<8x8xf32>
    %160 = vector.broadcast %110 : vector<1x8xf32> to vector<8x8xf32>
    %161 = arith.addf %159, %160 : vector<8x8xf32>
    %cst_69 = arith.constant dense<0xFF800000> : vector<8xf32>
    %162 = vector.multi_reduction <maximumf>, %161, %cst_69 [1] : vector<8x8xf32> to vector<8xf32>
    %163 = vector.shape_cast %162 : vector<8xf32> to vector<8x1xf32>
    %164 = vector.broadcast %163 : vector<8x1xf32> to vector<8x8xf32>
    %165 = arith.subf %161, %164 : vector<8x8xf32>
    %166 = math.exp %165 : vector<8x8xf32>
    %cst_70 = arith.constant dense<0.000000e+00> : vector<8xf32>
    %167 = vector.multi_reduction <add>, %166, %cst_70 [1] : vector<8x8xf32> to vector<8xf32>
    %168 = vector.shape_cast %167 : vector<8xf32> to vector<8x1xf32>
    %169 = tpu.reciprocal %168 {approx = true} : vector<8x1xf32> -> vector<8x1xf32>
    %170 = vector.broadcast %169 : vector<8x1xf32> to vector<8x8xf32>
    %171 = arith.mulf %166, %170 : vector<8x8xf32>
    %cst_71 = arith.constant dense<0.000000e+00> : vector<8x8xf32>
    %172 = tpu.matmul %171, %155, %cst_71 {dimension_numbers = #tpu.dot_dimension_numbers<[1], [0], [0], [1], [0, 0, 1, 1], [], []>} : vector<8x8xf32>, vector<8x8xf32>, vector<8x8xf32> -> vector<8x8xf32>
    %c8_72 = arith.constant 8 : index
    %c16_73 = arith.constant 16 : index
    %173 = vector.load %arg19[%c8_72, %c16_73] : memref<16x32xf32, #tpu.memory_space<vmem>>, vector<8x8xf32>
    tpu.vector_store %arg19[%c8_72, %c16_73], %172 {strides = array<i32>} : memref<16x32xf32, #tpu.memory_space<vmem>>, vector<8x8xf32>,
    %174 = vector.extract_strided_slice %22 {offsets = [8, 24], sizes = [8, 8], strides = [1, 1]} : vector<16x96xf32> to vector<8x8xf32>
    %175 = vector.extract_strided_slice %22 {offsets = [8, 56], sizes = [8, 8], strides = [1, 1]} : vector<16x96xf32> to vector<8x8xf32>
    %176 = vector.extract_strided_slice %22 {offsets = [8, 88], sizes = [8, 8], strides = [1, 1]} : vector<16x96xf32> to vector<8x8xf32>
    %cst_74 = arith.constant dense<0.000000e+00> : vector<8x8xf32>
    %177 = tpu.matmul %174, %175, %cst_74 {dimension_numbers = #tpu.dot_dimension_numbers<[1], [1], [0], [0], [0, 0, 1, 0], [], []>} : vector<8x8xf32>, vector<8x8xf32>, vector<8x8xf32> -> vector<8x8xf32>
    %c3_75 = arith.constant 3 : index
    %c0_76 = arith.constant 0 : index
    %c0_77 = arith.constant 0 : index
    %178 = vector.load %arg3[%c3_75, %c0_76, %c0_77] : memref<4x8x8xf32, #tpu.memory_space<vmem>>, vector<1x8x8xf32>
    %179 = vector.shape_cast %178 : vector<1x8x8xf32> to vector<8x8xf32>
    %180 = arith.addf %177, %179 : vector<8x8xf32>
    %181 = vector.broadcast %110 : vector<1x8xf32> to vector<8x8xf32>
    %182 = arith.addf %180, %181 : vector<8x8xf32>
    %cst_78 = arith.constant dense<0xFF800000> : vector<8xf32>
    %183 = vector.multi_reduction <maximumf>, %182, %cst_78 [1] : vector<8x8xf32> to vector<8xf32>
    %184 = vector.shape_cast %183 : vector<8xf32> to vector<8x1xf32>
    %185 = vector.broadcast %184 : vector<8x1xf32> to vector<8x8xf32>
    %186 = arith.subf %182, %185 : vector<8x8xf32>
    %187 = math.exp %186 : vector<8x8xf32>
    %cst_79 = arith.constant dense<0.000000e+00> : vector<8xf32>
    %188 = vector.multi_reduction <add>, %187, %cst_79 [1] : vector<8x8xf32> to vector<8xf32>
    %189 = vector.shape_cast %188 : vector<8xf32> to vector<8x1xf32>
    %190 = tpu.reciprocal %189 {approx = true} : vector<8x1xf32> -> vector<8x1xf32>
    %191 = vector.broadcast %190 : vector<8x1xf32> to vector<8x8xf32>
    %192 = arith.mulf %187, %191 : vector<8x8xf32>
    %cst_80 = arith.constant dense<0.000000e+00> : vector<8x8xf32>
    %193 = tpu.matmul %192, %176, %cst_80 {dimension_numbers = #tpu.dot_dimension_numbers<[1], [0], [0], [1], [0, 0, 1, 1], [], []>} : vector<8x8xf32>, vector<8x8xf32>, vector<8x8xf32> -> vector<8x8xf32>
    %c8_81 = arith.constant 8 : index
    %c24_82 = arith.constant 24 : index
    %194 = vector.load %arg19[%c8_81, %c24_82] : memref<16x32xf32, #tpu.memory_space<vmem>>, vector<8x8xf32>
    tpu.vector_store %arg19[%c8_81, %c24_82], %193 {strides = array<i32>} : memref<16x32xf32, #tpu.memory_space<vmem>>, vector<8x8xf32>,
    %c0_83 = arith.constant 0 : index
    %c0_84 = arith.constant 0 : index
    %195 = vector.load %arg19[%c0_83, %c0_84] : memref<16x32xf32, #tpu.memory_space<vmem>>, vector<16x32xf32>
    %c0_85 = arith.constant 0 : index
    %c0_86 = arith.constant 0 : index
    %196 = vector.load %arg8[%c0_85, %c0_86] : memref<32x32xf32, #tpu.memory_space<vmem>>, vector<32x32xf32>
    %cst_87 = arith.constant dense<0.000000e+00> : vector<16x32xf32>
    %197 = tpu.matmul %195, %196, %cst_87 {dimension_numbers = #tpu.dot_dimension_numbers<[1], [0], [0], [1], [0, 0, 1, 1], [], []>} : vector<16x32xf32>, vector<32x32xf32>, vector<16x32xf32> -> vector<16x32xf32>
    %198 = arith.addf %7, %197 : vector<16x32xf32>
    %c0_88 = arith.constant 0 : index
    %c0_89 = arith.constant 0 : index
    %199 = vector.load %arg9[%c0_88, %c0_89] : memref<1x32xf32, #tpu.memory_space<vmem>>, vector<1x32xf32>
    %200 = arith.mulf %198, %198 : vector<16x32xf32>
    %cst_90 = arith.constant dense<0.000000e+00> : vector<16xf32>
    %201 = vector.multi_reduction <add>, %200, %cst_90 [1] : vector<16x32xf32> to vector<16xf32>
    %202 = vector.shape_cast %201 : vector<16xf32> to vector<16x1xf32>
    %cst_91 = arith.constant 3.200000e+01 : f32
    %203 = vector.broadcast %cst_91 : f32 to vector<16x1xf32>
    %204 = arith.divf %202, %203 : vector<16x1xf32>
    %cst_92 = arith.constant 9.99999997E-7 : f32
    %205 = vector.broadcast %cst_92 : f32 to vector<16x1xf32>
    %206 = arith.addf %204, %205 : vector<16x1xf32>
    %207 = math.rsqrt %206 : vector<16x1xf32>
    %208 = vector.broadcast %207 : vector<16x1xf32> to vector<16x32xf32>
    %209 = arith.mulf %198, %208 : vector<16x32xf32>
    %210 = vector.broadcast %199 : vector<1x32xf32> to vector<16x32xf32>
    %211 = arith.mulf %209, %210 : vector<16x32xf32>
    %c0_93 = arith.constant 0 : index
    %c0_94 = arith.constant 0 : index
    %212 = vector.load %arg10[%c0_93, %c0_94] : memref<32x64xf32, #tpu.memory_space<vmem>>, vector<32x64xf32>
    %cst_95 = arith.constant dense<0.000000e+00> : vector<16x64xf32>
    %213 = tpu.matmul %211, %212, %cst_95 {dimension_numbers = #tpu.dot_dimension_numbers<[1], [0], [0], [1], [0, 0, 1, 1], [], []>} : vector<16x32xf32>, vector<32x64xf32>, vector<16x64xf32> -> vector<16x64xf32>
    %cst_96 = arith.constant 0.000000e+00 : f32
    %214 = vector.broadcast %cst_96 : f32 to vector<16x64xf32>
    %215 = arith.maximumf %213, %214 : vector<16x64xf32>
    %c0_97 = arith.constant 0 : index
    %c0_98 = arith.constant 0 : index
    %216 = vector.load %arg11[%c0_97, %c0_98] : memref<64x32xf32, #tpu.memory_space<vmem>>, vector<64x32xf32>
    %cst_99 = arith.constant dense<0.000000e+00> : vector<16x32xf32>
    %217 = tpu.matmul %215, %216, %cst_99 {dimension_numbers = #tpu.dot_dimension_numbers<[1], [0], [0], [1], [0, 0, 1, 1], [], []>} : vector<16x64xf32>, vector<64x32xf32>, vector<16x32xf32> -> vector<16x32xf32>
    %218 = arith.addf %198, %217 : vector<16x32xf32>
    %c0_100 = arith.constant 0 : index
    %c0_101 = arith.constant 0 : index
    %219 = vector.load %arg12[%c0_100, %c0_101] : memref<1x32xf32, #tpu.memory_space<vmem>>, vector<1x32xf32>
    %220 = arith.mulf %218, %218 : vector<16x32xf32>
    %cst_102 = arith.constant dense<0.000000e+00> : vector<16xf32>
    %221 = vector.multi_reduction <add>, %220, %cst_102 [1] : vector<16x32xf32> to vector<16xf32>
    %222 = vector.shape_cast %221 : vector<16xf32> to vector<16x1xf32>
    %cst_103 = arith.constant 3.200000e+01 : f32
    %223 = vector.broadcast %cst_103 : f32 to vector<16x1xf32>
    %224 = arith.divf %222, %223 : vector<16x1xf32>
    %cst_104 = arith.constant 9.99999997E-7 : f32
    %225 = vector.broadcast %cst_104 : f32 to vector<16x1xf32>
    %226 = arith.addf %224, %225 : vector<16x1xf32>
    %227 = math.rsqrt %226 : vector<16x1xf32>
    %228 = vector.broadcast %227 : vector<16x1xf32> to vector<16x32xf32>
    %229 = arith.mulf %218, %228 : vector<16x32xf32>
    %230 = vector.broadcast %219 : vector<1x32xf32> to vector<16x32xf32>
    %231 = arith.mulf %229, %230 : vector<16x32xf32>
    %c0_105 = arith.constant 0 : index
    %c0_106 = arith.constant 0 : index
    %232 = vector.load %arg13[%c0_105, %c0_106] : memref<32x96xf32, #tpu.memory_space<vmem>>, vector<32x96xf32>
    %cst_107 = arith.constant dense<0.000000e+00> : vector<16x96xf32>
    %233 = tpu.matmul %231, %232, %cst_107 {dimension_numbers = #tpu.dot_dimension_numbers<[1], [0], [0], [1], [0, 0, 1, 1], [], []>} : vector<16x32xf32>, vector<32x96xf32>, vector<16x96xf32> -> vector<16x96xf32>
    %c0_108 = arith.constant 0 : index
    %c0_109 = arith.constant 0 : index
    %c0_110 = arith.constant 0 : index
    %234 = vector.load %arg4[%c0_108, %c0_109, %c0_110] : memref<2x1x8xf32, #tpu.memory_space<vmem>>, vector<1x1x8xf32>
    %235 = vector.shape_cast %234 : vector<1x1x8xf32> to vector<1x8xf32>
    %236 = vector.extract_strided_slice %233 {offsets = [0, 0], sizes = [8, 8], strides = [1, 1]} : vector<16x96xf32> to vector<8x8xf32>
    %237 = vector.extract_strided_slice %233 {offsets = [0, 32], sizes = [8, 8], strides = [1, 1]} : vector<16x96xf32> to vector<8x8xf32>
    %238 = vector.extract_strided_slice %233 {offsets = [0, 64], sizes = [8, 8], strides = [1, 1]} : vector<16x96xf32> to vector<8x8xf32>
    %cst_111 = arith.constant dense<0.000000e+00> : vector<8x8xf32>
    %239 = tpu.matmul %236, %237, %cst_111 {dimension_numbers = #tpu.dot_dimension_numbers<[1], [1], [0], [0], [0, 0, 1, 0], [], []>} : vector<8x8xf32>, vector<8x8xf32>, vector<8x8xf32> -> vector<8x8xf32>
    %c0_112 = arith.constant 0 : index
    %c0_113 = arith.constant 0 : index
    %c0_114 = arith.constant 0 : index
    %240 = vector.load %arg3[%c0_112, %c0_113, %c0_114] : memref<4x8x8xf32, #tpu.memory_space<vmem>>, vector<1x8x8xf32>
    %241 = vector.shape_cast %240 : vector<1x8x8xf32> to vector<8x8xf32>
    %242 = arith.addf %239, %241 : vector<8x8xf32>
    %243 = vector.broadcast %235 : vector<1x8xf32> to vector<8x8xf32>
    %244 = arith.addf %242, %243 : vector<8x8xf32>
    %cst_115 = arith.constant dense<0xFF800000> : vector<8xf32>
    %245 = vector.multi_reduction <maximumf>, %244, %cst_115 [1] : vector<8x8xf32> to vector<8xf32>
    %246 = vector.shape_cast %245 : vector<8xf32> to vector<8x1xf32>
    %247 = vector.broadcast %246 : vector<8x1xf32> to vector<8x8xf32>
    %248 = arith.subf %244, %247 : vector<8x8xf32>
    %249 = math.exp %248 : vector<8x8xf32>
    %cst_116 = arith.constant dense<0.000000e+00> : vector<8xf32>
    %250 = vector.multi_reduction <add>, %249, %cst_116 [1] : vector<8x8xf32> to vector<8xf32>
    %251 = vector.shape_cast %250 : vector<8xf32> to vector<8x1xf32>
    %252 = tpu.reciprocal %251 {approx = true} : vector<8x1xf32> -> vector<8x1xf32>
    %253 = vector.broadcast %252 : vector<8x1xf32> to vector<8x8xf32>
    %254 = arith.mulf %249, %253 : vector<8x8xf32>
    %cst_117 = arith.constant dense<0.000000e+00> : vector<8x8xf32>
    %255 = tpu.matmul %254, %238, %cst_117 {dimension_numbers = #tpu.dot_dimension_numbers<[1], [0], [0], [1], [0, 0, 1, 1], [], []>} : vector<8x8xf32>, vector<8x8xf32>, vector<8x8xf32> -> vector<8x8xf32>
    %c0_118 = arith.constant 0 : index
    %c0_119 = arith.constant 0 : index
    %256 = vector.load %arg19[%c0_118, %c0_119] : memref<16x32xf32, #tpu.memory_space<vmem>>, vector<8x8xf32>
    tpu.vector_store %arg19[%c0_118, %c0_119], %255 {strides = array<i32>} : memref<16x32xf32, #tpu.memory_space<vmem>>, vector<8x8xf32>,
    %257 = vector.extract_strided_slice %233 {offsets = [0, 8], sizes = [8, 8], strides = [1, 1]} : vector<16x96xf32> to vector<8x8xf32>
    %258 = vector.extract_strided_slice %233 {offsets = [0, 40], sizes = [8, 8], strides = [1, 1]} : vector<16x96xf32> to vector<8x8xf32>
    %259 = vector.extract_strided_slice %233 {offsets = [0, 72], sizes = [8, 8], strides = [1, 1]} : vector<16x96xf32> to vector<8x8xf32>
    %cst_120 = arith.constant dense<0.000000e+00> : vector<8x8xf32>
    %260 = tpu.matmul %257, %258, %cst_120 {dimension_numbers = #tpu.dot_dimension_numbers<[1], [1], [0], [0], [0, 0, 1, 0], [], []>} : vector<8x8xf32>, vector<8x8xf32>, vector<8x8xf32> -> vector<8x8xf32>
    %c1_121 = arith.constant 1 : index
    %c0_122 = arith.constant 0 : index
    %c0_123 = arith.constant 0 : index
    %261 = vector.load %arg3[%c1_121, %c0_122, %c0_123] : memref<4x8x8xf32, #tpu.memory_space<vmem>>, vector<1x8x8xf32>
    %262 = vector.shape_cast %261 : vector<1x8x8xf32> to vector<8x8xf32>
    %263 = arith.addf %260, %262 : vector<8x8xf32>
    %264 = vector.broadcast %235 : vector<1x8xf32> to vector<8x8xf32>
    %265 = arith.addf %263, %264 : vector<8x8xf32>
    %cst_124 = arith.constant dense<0xFF800000> : vector<8xf32>
    %266 = vector.multi_reduction <maximumf>, %265, %cst_124 [1] : vector<8x8xf32> to vector<8xf32>
    %267 = vector.shape_cast %266 : vector<8xf32> to vector<8x1xf32>
    %268 = vector.broadcast %267 : vector<8x1xf32> to vector<8x8xf32>
    %269 = arith.subf %265, %268 : vector<8x8xf32>
    %270 = math.exp %269 : vector<8x8xf32>
    %cst_125 = arith.constant dense<0.000000e+00> : vector<8xf32>
    %271 = vector.multi_reduction <add>, %270, %cst_125 [1] : vector<8x8xf32> to vector<8xf32>
    %272 = vector.shape_cast %271 : vector<8xf32> to vector<8x1xf32>
    %273 = tpu.reciprocal %272 {approx = true} : vector<8x1xf32> -> vector<8x1xf32>
    %274 = vector.broadcast %273 : vector<8x1xf32> to vector<8x8xf32>
    %275 = arith.mulf %270, %274 : vector<8x8xf32>
    %cst_126 = arith.constant dense<0.000000e+00> : vector<8x8xf32>
    %276 = tpu.matmul %275, %259, %cst_126 {dimension_numbers = #tpu.dot_dimension_numbers<[1], [0], [0], [1], [0, 0, 1, 1], [], []>} : vector<8x8xf32>, vector<8x8xf32>, vector<8x8xf32> -> vector<8x8xf32>
    %c0_127 = arith.constant 0 : index
    %c8_128 = arith.constant 8 : index
    %277 = vector.load %arg19[%c0_127, %c8_128] : memref<16x32xf32, #tpu.memory_space<vmem>>, vector<8x8xf32>
    tpu.vector_store %arg19[%c0_127, %c8_128], %276 {strides = array<i32>} : memref<16x32xf32, #tpu.memory_space<vmem>>, vector<8x8xf32>,
    %278 = vector.extract_strided_slice %233 {offsets = [0, 16], sizes = [8, 8], strides = [1, 1]} : vector<16x96xf32> to vector<8x8xf32>
    %279 = vector.extract_strided_slice %233 {offsets = [0, 48], sizes = [8, 8], strides = [1, 1]} : vector<16x96xf32> to vector<8x8xf32>
    %280 = vector.extract_strided_slice %233 {offsets = [0, 80], sizes = [8, 8], strides = [1, 1]} : vector<16x96xf32> to vector<8x8xf32>
    %cst_129 = arith.constant dense<0.000000e+00> : vector<8x8xf32>
    %281 = tpu.matmul %278, %279, %cst_129 {dimension_numbers = #tpu.dot_dimension_numbers<[1], [1], [0], [0], [0, 0, 1, 0], [], []>} : vector<8x8xf32>, vector<8x8xf32>, vector<8x8xf32> -> vector<8x8xf32>
    %c2_130 = arith.constant 2 : index
    %c0_131 = arith.constant 0 : index
    %c0_132 = arith.constant 0 : index
    %282 = vector.load %arg3[%c2_130, %c0_131, %c0_132] : memref<4x8x8xf32, #tpu.memory_space<vmem>>, vector<1x8x8xf32>
    %283 = vector.shape_cast %282 : vector<1x8x8xf32> to vector<8x8xf32>
    %284 = arith.addf %281, %283 : vector<8x8xf32>
    %285 = vector.broadcast %235 : vector<1x8xf32> to vector<8x8xf32>
    %286 = arith.addf %284, %285 : vector<8x8xf32>
    %cst_133 = arith.constant dense<0xFF800000> : vector<8xf32>
    %287 = vector.multi_reduction <maximumf>, %286, %cst_133 [1] : vector<8x8xf32> to vector<8xf32>
    %288 = vector.shape_cast %287 : vector<8xf32> to vector<8x1xf32>
    %289 = vector.broadcast %288 : vector<8x1xf32> to vector<8x8xf32>
    %290 = arith.subf %286, %289 : vector<8x8xf32>
    %291 = math.exp %290 : vector<8x8xf32>
    %cst_134 = arith.constant dense<0.000000e+00> : vector<8xf32>
    %292 = vector.multi_reduction <add>, %291, %cst_134 [1] : vector<8x8xf32> to vector<8xf32>
    %293 = vector.shape_cast %292 : vector<8xf32> to vector<8x1xf32>
    %294 = tpu.reciprocal %293 {approx = true} : vector<8x1xf32> -> vector<8x1xf32>
    %295 = vector.broadcast %294 : vector<8x1xf32> to vector<8x8xf32>
    %296 = arith.mulf %291, %295 : vector<8x8xf32>
    %cst_135 = arith.constant dense<0.000000e+00> : vector<8x8xf32>
    %297 = tpu.matmul %296, %280, %cst_135 {dimension_numbers = #tpu.dot_dimension_numbers<[1], [0], [0], [1], [0, 0, 1, 1], [], []>} : vector<8x8xf32>, vector<8x8xf32>, vector<8x8xf32> -> vector<8x8xf32>
    %c0_136 = arith.constant 0 : index
    %c16_137 = arith.constant 16 : index
    %298 = vector.load %arg19[%c0_136, %c16_137] : memref<16x32xf32, #tpu.memory_space<vmem>>, vector<8x8xf32>
    tpu.vector_store %arg19[%c0_136, %c16_137], %297 {strides = array<i32>} : memref<16x32xf32, #tpu.memory_space<vmem>>, vector<8x8xf32>,
    %299 = vector.extract_strided_slice %233 {offsets = [0, 24], sizes = [8, 8], strides = [1, 1]} : vector<16x96xf32> to vector<8x8xf32>
    %300 = vector.extract_strided_slice %233 {offsets = [0, 56], sizes = [8, 8], strides = [1, 1]} : vector<16x96xf32> to vector<8x8xf32>
    %301 = vector.extract_strided_slice %233 {offsets = [0, 88], sizes = [8, 8], strides = [1, 1]} : vector<16x96xf32> to vector<8x8xf32>
    %cst_138 = arith.constant dense<0.000000e+00> : vector<8x8xf32>
    %302 = tpu.matmul %299, %300, %cst_138 {dimension_numbers = #tpu.dot_dimension_numbers<[1], [1], [0], [0], [0, 0, 1, 0], [], []>} : vector<8x8xf32>, vector<8x8xf32>, vector<8x8xf32> -> vector<8x8xf32>
    %c3_139 = arith.constant 3 : index
    %c0_140 = arith.constant 0 : index
    %c0_141 = arith.constant 0 : index
    %303 = vector.load %arg3[%c3_139, %c0_140, %c0_141] : memref<4x8x8xf32, #tpu.memory_space<vmem>>, vector<1x8x8xf32>
    %304 = vector.shape_cast %303 : vector<1x8x8xf32> to vector<8x8xf32>
    %305 = arith.addf %302, %304 : vector<8x8xf32>
    %306 = vector.broadcast %235 : vector<1x8xf32> to vector<8x8xf32>
    %307 = arith.addf %305, %306 : vector<8x8xf32>
    %cst_142 = arith.constant dense<0xFF800000> : vector<8xf32>
    %308 = vector.multi_reduction <maximumf>, %307, %cst_142 [1] : vector<8x8xf32> to vector<8xf32>
    %309 = vector.shape_cast %308 : vector<8xf32> to vector<8x1xf32>
    %310 = vector.broadcast %309 : vector<8x1xf32> to vector<8x8xf32>
    %311 = arith.subf %307, %310 : vector<8x8xf32>
    %312 = math.exp %311 : vector<8x8xf32>
    %cst_143 = arith.constant dense<0.000000e+00> : vector<8xf32>
    %313 = vector.multi_reduction <add>, %312, %cst_143 [1] : vector<8x8xf32> to vector<8xf32>
    %314 = vector.shape_cast %313 : vector<8xf32> to vector<8x1xf32>
    %315 = tpu.reciprocal %314 {approx = true} : vector<8x1xf32> -> vector<8x1xf32>
    %316 = vector.broadcast %315 : vector<8x1xf32> to vector<8x8xf32>
    %317 = arith.mulf %312, %316 : vector<8x8xf32>
    %cst_144 = arith.constant dense<0.000000e+00> : vector<8x8xf32>
    %318 = tpu.matmul %317, %301, %cst_144 {dimension_numbers = #tpu.dot_dimension_numbers<[1], [0], [0], [1], [0, 0, 1, 1], [], []>} : vector<8x8xf32>, vector<8x8xf32>, vector<8x8xf32> -> vector<8x8xf32>
    %c0_145 = arith.constant 0 : index
    %c24_146 = arith.constant 24 : index
    %319 = vector.load %arg19[%c0_145, %c24_146] : memref<16x32xf32, #tpu.memory_space<vmem>>, vector<8x8xf32>
    tpu.vector_store %arg19[%c0_145, %c24_146], %318 {strides = array<i32>} : memref<16x32xf32, #tpu.memory_space<vmem>>, vector<8x8xf32>,
    %c1_147 = arith.constant 1 : index
    %c0_148 = arith.constant 0 : index
    %c0_149 = arith.constant 0 : index
    %320 = vector.load %arg4[%c1_147, %c0_148, %c0_149] : memref<2x1x8xf32, #tpu.memory_space<vmem>>, vector<1x1x8xf32>
    %321 = vector.shape_cast %320 : vector<1x1x8xf32> to vector<1x8xf32>
    %322 = vector.extract_strided_slice %233 {offsets = [8, 0], sizes = [8, 8], strides = [1, 1]} : vector<16x96xf32> to vector<8x8xf32>
    %323 = vector.extract_strided_slice %233 {offsets = [8, 32], sizes = [8, 8], strides = [1, 1]} : vector<16x96xf32> to vector<8x8xf32>
    %324 = vector.extract_strided_slice %233 {offsets = [8, 64], sizes = [8, 8], strides = [1, 1]} : vector<16x96xf32> to vector<8x8xf32>
    %cst_150 = arith.constant dense<0.000000e+00> : vector<8x8xf32>
    %325 = tpu.matmul %322, %323, %cst_150 {dimension_numbers = #tpu.dot_dimension_numbers<[1], [1], [0], [0], [0, 0, 1, 0], [], []>} : vector<8x8xf32>, vector<8x8xf32>, vector<8x8xf32> -> vector<8x8xf32>
    %c0_151 = arith.constant 0 : index
    %c0_152 = arith.constant 0 : index
    %c0_153 = arith.constant 0 : index
    %326 = vector.load %arg3[%c0_151, %c0_152, %c0_153] : memref<4x8x8xf32, #tpu.memory_space<vmem>>, vector<1x8x8xf32>
    %327 = vector.shape_cast %326 : vector<1x8x8xf32> to vector<8x8xf32>
    %328 = arith.addf %325, %327 : vector<8x8xf32>
    %329 = vector.broadcast %321 : vector<1x8xf32> to vector<8x8xf32>
    %330 = arith.addf %328, %329 : vector<8x8xf32>
    %cst_154 = arith.constant dense<0xFF800000> : vector<8xf32>
    %331 = vector.multi_reduction <maximumf>, %330, %cst_154 [1] : vector<8x8xf32> to vector<8xf32>
    %332 = vector.shape_cast %331 : vector<8xf32> to vector<8x1xf32>
    %333 = vector.broadcast %332 : vector<8x1xf32> to vector<8x8xf32>
    %334 = arith.subf %330, %333 : vector<8x8xf32>
    %335 = math.exp %334 : vector<8x8xf32>
    %cst_155 = arith.constant dense<0.000000e+00> : vector<8xf32>
    %336 = vector.multi_reduction <add>, %335, %cst_155 [1] : vector<8x8xf32> to vector<8xf32>
    %337 = vector.shape_cast %336 : vector<8xf32> to vector<8x1xf32>
    %338 = tpu.reciprocal %337 {approx = true} : vector<8x1xf32> -> vector<8x1xf32>
    %339 = vector.broadcast %338 : vector<8x1xf32> to vector<8x8xf32>
    %340 = arith.mulf %335, %339 : vector<8x8xf32>
    %cst_156 = arith.constant dense<0.000000e+00> : vector<8x8xf32>
    %341 = tpu.matmul %340, %324, %cst_156 {dimension_numbers = #tpu.dot_dimension_numbers<[1], [0], [0], [1], [0, 0, 1, 1], [], []>} : vector<8x8xf32>, vector<8x8xf32>, vector<8x8xf32> -> vector<8x8xf32>
    %c8_157 = arith.constant 8 : index
    %c0_158 = arith.constant 0 : index
    %342 = vector.load %arg19[%c8_157, %c0_158] : memref<16x32xf32, #tpu.memory_space<vmem>>, vector<8x8xf32>
    tpu.vector_store %arg19[%c8_157, %c0_158], %341 {strides = array<i32>} : memref<16x32xf32, #tpu.memory_space<vmem>>, vector<8x8xf32>,
    %343 = vector.extract_strided_slice %233 {offsets = [8, 8], sizes = [8, 8], strides = [1, 1]} : vector<16x96xf32> to vector<8x8xf32>
    %344 = vector.extract_strided_slice %233 {offsets = [8, 40], sizes = [8, 8], strides = [1, 1]} : vector<16x96xf32> to vector<8x8xf32>
    %345 = vector.extract_strided_slice %233 {offsets = [8, 72], sizes = [8, 8], strides = [1, 1]} : vector<16x96xf32> to vector<8x8xf32>
    %cst_159 = arith.constant dense<0.000000e+00> : vector<8x8xf32>
    %346 = tpu.matmul %343, %344, %cst_159 {dimension_numbers = #tpu.dot_dimension_numbers<[1], [1], [0], [0], [0, 0, 1, 0], [], []>} : vector<8x8xf32>, vector<8x8xf32>, vector<8x8xf32> -> vector<8x8xf32>
    %c1_160 = arith.constant 1 : index
    %c0_161 = arith.constant 0 : index
    %c0_162 = arith.constant 0 : index
    %347 = vector.load %arg3[%c1_160, %c0_161, %c0_162] : memref<4x8x8xf32, #tpu.memory_space<vmem>>, vector<1x8x8xf32>
    %348 = vector.shape_cast %347 : vector<1x8x8xf32> to vector<8x8xf32>
    %349 = arith.addf %346, %348 : vector<8x8xf32>
    %350 = vector.broadcast %321 : vector<1x8xf32> to vector<8x8xf32>
    %351 = arith.addf %349, %350 : vector<8x8xf32>
    %cst_163 = arith.constant dense<0xFF800000> : vector<8xf32>
    %352 = vector.multi_reduction <maximumf>, %351, %cst_163 [1] : vector<8x8xf32> to vector<8xf32>
    %353 = vector.shape_cast %352 : vector<8xf32> to vector<8x1xf32>
    %354 = vector.broadcast %353 : vector<8x1xf32> to vector<8x8xf32>
    %355 = arith.subf %351, %354 : vector<8x8xf32>
    %356 = math.exp %355 : vector<8x8xf32>
    %cst_164 = arith.constant dense<0.000000e+00> : vector<8xf32>
    %357 = vector.multi_reduction <add>, %356, %cst_164 [1] : vector<8x8xf32> to vector<8xf32>
    %358 = vector.shape_cast %357 : vector<8xf32> to vector<8x1xf32>
    %359 = tpu.reciprocal %358 {approx = true} : vector<8x1xf32> -> vector<8x1xf32>
    %360 = vector.broadcast %359 : vector<8x1xf32> to vector<8x8xf32>
    %361 = arith.mulf %356, %360 : vector<8x8xf32>
    %cst_165 = arith.constant dense<0.000000e+00> : vector<8x8xf32>
    %362 = tpu.matmul %361, %345, %cst_165 {dimension_numbers = #tpu.dot_dimension_numbers<[1], [0], [0], [1], [0, 0, 1, 1], [], []>} : vector<8x8xf32>, vector<8x8xf32>, vector<8x8xf32> -> vector<8x8xf32>
    %c8_166 = arith.constant 8 : index
    %c8_167 = arith.constant 8 : index
    %363 = vector.load %arg19[%c8_166, %c8_167] : memref<16x32xf32, #tpu.memory_space<vmem>>, vector<8x8xf32>
    tpu.vector_store %arg19[%c8_166, %c8_167], %362 {strides = array<i32>} : memref<16x32xf32, #tpu.memory_space<vmem>>, vector<8x8xf32>,
    %364 = vector.extract_strided_slice %233 {offsets = [8, 16], sizes = [8, 8], strides = [1, 1]} : vector<16x96xf32> to vector<8x8xf32>
    %365 = vector.extract_strided_slice %233 {offsets = [8, 48], sizes = [8, 8], strides = [1, 1]} : vector<16x96xf32> to vector<8x8xf32>
    %366 = vector.extract_strided_slice %233 {offsets = [8, 80], sizes = [8, 8], strides = [1, 1]} : vector<16x96xf32> to vector<8x8xf32>
    %cst_168 = arith.constant dense<0.000000e+00> : vector<8x8xf32>
    %367 = tpu.matmul %364, %365, %cst_168 {dimension_numbers = #tpu.dot_dimension_numbers<[1], [1], [0], [0], [0, 0, 1, 0], [], []>} : vector<8x8xf32>, vector<8x8xf32>, vector<8x8xf32> -> vector<8x8xf32>
    %c2_169 = arith.constant 2 : index
    %c0_170 = arith.constant 0 : index
    %c0_171 = arith.constant 0 : index
    %368 = vector.load %arg3[%c2_169, %c0_170, %c0_171] : memref<4x8x8xf32, #tpu.memory_space<vmem>>, vector<1x8x8xf32>
    %369 = vector.shape_cast %368 : vector<1x8x8xf32> to vector<8x8xf32>
    %370 = arith.addf %367, %369 : vector<8x8xf32>
    %371 = vector.broadcast %321 : vector<1x8xf32> to vector<8x8xf32>
    %372 = arith.addf %370, %371 : vector<8x8xf32>
    %cst_172 = arith.constant dense<0xFF800000> : vector<8xf32>
    %373 = vector.multi_reduction <maximumf>, %372, %cst_172 [1] : vector<8x8xf32> to vector<8xf32>
    %374 = vector.shape_cast %373 : vector<8xf32> to vector<8x1xf32>
    %375 = vector.broadcast %374 : vector<8x1xf32> to vector<8x8xf32>
    %376 = arith.subf %372, %375 : vector<8x8xf32>
    %377 = math.exp %376 : vector<8x8xf32>
    %cst_173 = arith.constant dense<0.000000e+00> : vector<8xf32>
    %378 = vector.multi_reduction <add>, %377, %cst_173 [1] : vector<8x8xf32> to vector<8xf32>
    %379 = vector.shape_cast %378 : vector<8xf32> to vector<8x1xf32>
    %380 = tpu.reciprocal %379 {approx = true} : vector<8x1xf32> -> vector<8x1xf32>
    %381 = vector.broadcast %380 : vector<8x1xf32> to vector<8x8xf32>
    %382 = arith.mulf %377, %381 : vector<8x8xf32>
    %cst_174 = arith.constant dense<0.000000e+00> : vector<8x8xf32>
    %383 = tpu.matmul %382, %366, %cst_174 {dimension_numbers = #tpu.dot_dimension_numbers<[1], [0], [0], [1], [0, 0, 1, 1], [], []>} : vector<8x8xf32>, vector<8x8xf32>, vector<8x8xf32> -> vector<8x8xf32>
    %c8_175 = arith.constant 8 : index
    %c16_176 = arith.constant 16 : index
    %384 = vector.load %arg19[%c8_175, %c16_176] : memref<16x32xf32, #tpu.memory_space<vmem>>, vector<8x8xf32>
    tpu.vector_store %arg19[%c8_175, %c16_176], %383 {strides = array<i32>} : memref<16x32xf32, #tpu.memory_space<vmem>>, vector<8x8xf32>,
    %385 = vector.extract_strided_slice %233 {offsets = [8, 24], sizes = [8, 8], strides = [1, 1]} : vector<16x96xf32> to vector<8x8xf32>
    %386 = vector.extract_strided_slice %233 {offsets = [8, 56], sizes = [8, 8], strides = [1, 1]} : vector<16x96xf32> to vector<8x8xf32>
    %387 = vector.extract_strided_slice %233 {offsets = [8, 88], sizes = [8, 8], strides = [1, 1]} : vector<16x96xf32> to vector<8x8xf32>
    %cst_177 = arith.constant dense<0.000000e+00> : vector<8x8xf32>
    %388 = tpu.matmul %385, %386, %cst_177 {dimension_numbers = #tpu.dot_dimension_numbers<[1], [1], [0], [0], [0, 0, 1, 0], [], []>} : vector<8x8xf32>, vector<8x8xf32>, vector<8x8xf32> -> vector<8x8xf32>
    %c3_178 = arith.constant 3 : index
    %c0_179 = arith.constant 0 : index
    %c0_180 = arith.constant 0 : index
    %389 = vector.load %arg3[%c3_178, %c0_179, %c0_180] : memref<4x8x8xf32, #tpu.memory_space<vmem>>, vector<1x8x8xf32>
    %390 = vector.shape_cast %389 : vector<1x8x8xf32> to vector<8x8xf32>
    %391 = arith.addf %388, %390 : vector<8x8xf32>
    %392 = vector.broadcast %321 : vector<1x8xf32> to vector<8x8xf32>
    %393 = arith.addf %391, %392 : vector<8x8xf32>
    %cst_181 = arith.constant dense<0xFF800000> : vector<8xf32>
    %394 = vector.multi_reduction <maximumf>, %393, %cst_181 [1] : vector<8x8xf32> to vector<8xf32>
    %395 = vector.shape_cast %394 : vector<8xf32> to vector<8x1xf32>
    %396 = vector.broadcast %395 : vector<8x1xf32> to vector<8x8xf32>
    %397 = arith.subf %393, %396 : vector<8x8xf32>
    %398 = math.exp %397 : vector<8x8xf32>
    %cst_182 = arith.constant dense<0.000000e+00> : vector<8xf32>
    %399 = vector.multi_reduction <add>, %398, %cst_182 [1] : vector<8x8xf32> to vector<8xf32>
    %400 = vector.shape_cast %399 : vector<8xf32> to vector<8x1xf32>
    %401 = tpu.reciprocal %400 {approx = true} : vector<8x1xf32> -> vector<8x1xf32>
    %402 = vector.broadcast %401 : vector<8x1xf32> to vector<8x8xf32>
    %403 = arith.mulf %398, %402 : vector<8x8xf32>
    %cst_183 = arith.constant dense<0.000000e+00> : vector<8x8xf32>
    %404 = tpu.matmul %403, %387, %cst_183 {dimension_numbers = #tpu.dot_dimension_numbers<[1], [0], [0], [1], [0, 0, 1, 1], [], []>} : vector<8x8xf32>, vector<8x8xf32>, vector<8x8xf32> -> vector<8x8xf32>
    %c8_184 = arith.constant 8 : index
    %c24_185 = arith.constant 24 : index
    %405 = vector.load %arg19[%c8_184, %c24_185] : memref<16x32xf32, #tpu.memory_space<vmem>>, vector<8x8xf32>
    tpu.vector_store %arg19[%c8_184, %c24_185], %404 {strides = array<i32>} : memref<16x32xf32, #tpu.memory_space<vmem>>, vector<8x8xf32>,
    %c0_186 = arith.constant 0 : index
    %c0_187 = arith.constant 0 : index
    %406 = vector.load %arg19[%c0_186, %c0_187] : memref<16x32xf32, #tpu.memory_space<vmem>>, vector<16x32xf32>
    %c0_188 = arith.constant 0 : index
    %c0_189 = arith.constant 0 : index
    %407 = vector.load %arg14[%c0_188, %c0_189] : memref<32x32xf32, #tpu.memory_space<vmem>>, vector<32x32xf32>
    %cst_190 = arith.constant dense<0.000000e+00> : vector<16x32xf32>
    %408 = tpu.matmul %406, %407, %cst_190 {dimension_numbers = #tpu.dot_dimension_numbers<[1], [0], [0], [1], [0, 0, 1, 1], [], []>} : vector<16x32xf32>, vector<32x32xf32>, vector<16x32xf32> -> vector<16x32xf32>
    %409 = arith.addf %218, %408 : vector<16x32xf32>
    %c0_191 = arith.constant 0 : index
    %c0_192 = arith.constant 0 : index
    %410 = vector.load %arg15[%c0_191, %c0_192] : memref<1x32xf32, #tpu.memory_space<vmem>>, vector<1x32xf32>
    %411 = arith.mulf %409, %409 : vector<16x32xf32>
    %cst_193 = arith.constant dense<0.000000e+00> : vector<16xf32>
    %412 = vector.multi_reduction <add>, %411, %cst_193 [1] : vector<16x32xf32> to vector<16xf32>
    %413 = vector.shape_cast %412 : vector<16xf32> to vector<16x1xf32>
    %cst_194 = arith.constant 3.200000e+01 : f32
    %414 = vector.broadcast %cst_194 : f32 to vector<16x1xf32>
    %415 = arith.divf %413, %414 : vector<16x1xf32>
    %cst_195 = arith.constant 9.99999997E-7 : f32
    %416 = vector.broadcast %cst_195 : f32 to vector<16x1xf32>
    %417 = arith.addf %415, %416 : vector<16x1xf32>
    %418 = math.rsqrt %417 : vector<16x1xf32>
    %419 = vector.broadcast %418 : vector<16x1xf32> to vector<16x32xf32>
    %420 = arith.mulf %409, %419 : vector<16x32xf32>
    %421 = vector.broadcast %410 : vector<1x32xf32> to vector<16x32xf32>
    %422 = arith.mulf %420, %421 : vector<16x32xf32>
    %c0_196 = arith.constant 0 : index
    %c0_197 = arith.constant 0 : index
    %423 = vector.load %arg16[%c0_196, %c0_197] : memref<32x64xf32, #tpu.memory_space<vmem>>, vector<32x64xf32>
    %cst_198 = arith.constant dense<0.000000e+00> : vector<16x64xf32>
    %424 = tpu.matmul %422, %423, %cst_198 {dimension_numbers = #tpu.dot_dimension_numbers<[1], [0], [0], [1], [0, 0, 1, 1], [], []>} : vector<16x32xf32>, vector<32x64xf32>, vector<16x64xf32> -> vector<16x64xf32>
    %cst_199 = arith.constant 0.000000e+00 : f32
    %425 = vector.broadcast %cst_199 : f32 to vector<16x64xf32>
    %426 = arith.maximumf %424, %425 : vector<16x64xf32>
    %c0_200 = arith.constant 0 : index
    %c0_201 = arith.constant 0 : index
    %427 = vector.load %arg17[%c0_200, %c0_201] : memref<64x32xf32, #tpu.memory_space<vmem>>, vector<64x32xf32>
    %cst_202 = arith.constant dense<0.000000e+00> : vector<16x32xf32>
    %428 = tpu.matmul %426, %427, %cst_202 {dimension_numbers = #tpu.dot_dimension_numbers<[1], [0], [0], [1], [0, 0, 1, 1], [], []>} : vector<16x64xf32>, vector<64x32xf32>, vector<16x32xf32> -> vector<16x32xf32>
    %429 = arith.addf %409, %428 : vector<16x32xf32>
    %c0_203 = arith.constant 0 : index
    %c0_204 = arith.constant 0 : index
    %430 = vector.load %arg5[%c0_203, %c0_204] : memref<1x32xf32, #tpu.memory_space<vmem>>, vector<1x32xf32>
    %431 = arith.mulf %429, %429 : vector<16x32xf32>
    %cst_205 = arith.constant dense<0.000000e+00> : vector<16xf32>
    %432 = vector.multi_reduction <add>, %431, %cst_205 [1] : vector<16x32xf32> to vector<16xf32>
    %433 = vector.shape_cast %432 : vector<16xf32> to vector<16x1xf32>
    %cst_206 = arith.constant 3.200000e+01 : f32
    %434 = vector.broadcast %cst_206 : f32 to vector<16x1xf32>
    %435 = arith.divf %433, %434 : vector<16x1xf32>
    %cst_207 = arith.constant 9.99999997E-7 : f32
    %436 = vector.broadcast %cst_207 : f32 to vector<16x1xf32>
    %437 = arith.addf %435, %436 : vector<16x1xf32>
    %438 = math.rsqrt %437 : vector<16x1xf32>
    %439 = vector.broadcast %438 : vector<16x1xf32> to vector<16x32xf32>
    %440 = arith.mulf %429, %439 : vector<16x32xf32>
    %441 = vector.broadcast %430 : vector<1x32xf32> to vector<16x32xf32>
    %442 = arith.mulf %440, %441 : vector<16x32xf32>
    %443 = vector.extract_strided_slice %442 {offsets = [0, 0], sizes = [8, 32], strides = [1, 1]} : vector<16x32xf32> to vector<8x32xf32>
    %cst_208 = arith.constant dense<0.000000e+00> : vector<32xf32>
    %444 = vector.multi_reduction <add>, %443, %cst_208 [0] : vector<8x32xf32> to vector<32xf32>
    %445 = vector.shape_cast %444 : vector<32xf32> to vector<1x32xf32>
    %cst_209 = arith.constant 8.000000e+00 : f32
    %446 = vector.broadcast %cst_209 : f32 to vector<1x32xf32>
    %447 = arith.divf %445, %446 : vector<1x32xf32>
    %c0_210 = arith.constant 0 : index
    %c0_211 = arith.constant 0 : index
    %448 = vector.load %arg18[%c0_210, %c0_211] : memref<2x32xf32, #tpu.memory_space<vmem>>, vector<1x32xf32>
    tpu.vector_store %arg18[%c0_210, %c0_211], %447 {strides = array<i32>} : memref<2x32xf32, #tpu.memory_space<vmem>>, vector<1x32xf32>,
    %449 = vector.extract_strided_slice %442 {offsets = [8, 0], sizes = [8, 32], strides = [1, 1]} : vector<16x32xf32> to vector<8x32xf32>
    %cst_212 = arith.constant dense<0.000000e+00> : vector<32xf32>
    %450 = vector.multi_reduction <add>, %449, %cst_212 [0] : vector<8x32xf32> to vector<32xf32>
    %451 = vector.shape_cast %450 : vector<32xf32> to vector<1x32xf32>
    %cst_213 = arith.constant 8.000000e+00 : f32
    %452 = vector.broadcast %cst_213 : f32 to vector<1x32xf32>
    %453 = arith.divf %451, %452 : vector<1x32xf32>
    %c1_214 = arith.constant 1 : index
    %c0_215 = arith.constant 0 : index
    %454 = vector.load %arg18[%c1_214, %c0_215] : memref<2x32xf32, #tpu.memory_space<vmem>>, vector<1x32xf32>
    tpu.vector_store %arg18[%c1_214, %c0_215], %453 {strides = array<i32>} : memref<2x32xf32, #tpu.memory_space<vmem>>, vector<1x32xf32>,
    return
  }
  func.func @transform_0(%arg0: i32) -> (i32, i32) {
    %c0_i32 = arith.constant 0 : i32
    %c0_i32_0 = arith.constant 0 : i32
    %c0_i32_1 = arith.constant 0 : i32
    return %c0_i32, %c0_i32_0 : i32, i32
  }
  func.func @transform_1(%arg0: i32) -> (i32, i32) {
    %c0_i32 = arith.constant 0 : i32
    %c0_i32_0 = arith.constant 0 : i32
    %c0_i32_1 = arith.constant 0 : i32
    return %c0_i32, %c0_i32_0 : i32, i32
  }
  func.func @transform_2(%arg0: i32) -> (i32, i32, i32) {
    %c0_i32 = arith.constant 0 : i32
    %c0_i32_0 = arith.constant 0 : i32
    %c0_i32_1 = arith.constant 0 : i32
    %c0_i32_2 = arith.constant 0 : i32
    return %c0_i32, %c0_i32_0, %c0_i32_1 : i32, i32, i32
  }
  func.func @transform_3(%arg0: i32) -> (i32, i32, i32) {
    %c0_i32 = arith.constant 0 : i32
    %c0_i32_0 = arith.constant 0 : i32
    %c0_i32_1 = arith.constant 0 : i32
    %c0_i32_2 = arith.constant 0 : i32
    return %c0_i32, %c0_i32_0, %c0_i32_1 : i32, i32, i32
  }
  func.func @transform_4(%arg0: i32) -> (i32, i32) {
    %c0_i32 = arith.constant 0 : i32
    %c0_i32_0 = arith.constant 0 : i32
    %c0_i32_1 = arith.constant 0 : i32
    return %c0_i32, %c0_i32_0 : i32, i32
  }
  func.func @transform_5(%arg0: i32) -> (i32, i32) {
    %c0_i32 = arith.constant 0 : i32
    %c0_i32_0 = arith.constant 0 : i32
    %c0_i32_1 = arith.constant 0 : i32
    return %c0_i32, %c0_i32_0 : i32, i32
  }
  func.func @transform_6(%arg0: i32) -> (i32, i32) {
    %c0_i32 = arith.constant 0 : i32
    %c0_i32_0 = arith.constant 0 : i32
    %c0_i32_1 = arith.constant 0 : i32
    return %c0_i32, %c0_i32_0 : i32, i32
  }
  func.func @transform_7(%arg0: i32) -> (i32, i32) {
    %c0_i32 = arith.constant 0 : i32
    %c0_i32_0 = arith.constant 0 : i32
    %c0_i32_1 = arith.constant 0 : i32
    return %c0_i32, %c0_i32_0 : i32, i32
  }
  func.func @transform_8(%arg0: i32) -> (i32, i32) {
    %c0_i32 = arith.constant 0 : i32
    %c0_i32_0 = arith.constant 0 : i32
    %c0_i32_1 = arith.constant 0 : i32
    return %c0_i32, %c0_i32_0 : i32, i32
  }
  func.func @transform_9(%arg0: i32) -> (i32, i32) {
    %c0_i32 = arith.constant 0 : i32
    %c0_i32_0 = arith.constant 0 : i32
    %c0_i32_1 = arith.constant 0 : i32
    return %c0_i32, %c0_i32_0 : i32, i32
  }
  func.func @transform_10(%arg0: i32) -> (i32, i32) {
    %c0_i32 = arith.constant 0 : i32
    %c0_i32_0 = arith.constant 0 : i32
    %c0_i32_1 = arith.constant 0 : i32
    return %c0_i32, %c0_i32_0 : i32, i32
  }
  func.func @transform_11(%arg0: i32) -> (i32, i32) {
    %c0_i32 = arith.constant 0 : i32
    %c0_i32_0 = arith.constant 0 : i32
    %c0_i32_1 = arith.constant 0 : i32
    return %c0_i32, %c0_i32_0 : i32, i32
  }
  func.func @transform_12(%arg0: i32) -> (i32, i32) {
    %c0_i32 = arith.constant 0 : i32
    %c0_i32_0 = arith.constant 0 : i32
    %c0_i32_1 = arith.constant 0 : i32
    return %c0_i32, %c0_i32_0 : i32, i32
  }
  func.func @transform_13(%arg0: i32) -> (i32, i32) {
    %c0_i32 = arith.constant 0 : i32
    %c0_i32_0 = arith.constant 0 : i32
    %c0_i32_1 = arith.constant 0 : i32
    return %c0_i32, %c0_i32_0 : i32, i32
  }
  func.func @transform_14(%arg0: i32) -> (i32, i32) {
    %c0_i32 = arith.constant 0 : i32
    %c0_i32_0 = arith.constant 0 : i32
    %c0_i32_1 = arith.constant 0 : i32
    return %c0_i32, %c0_i32_0 : i32, i32
  }
  func.func @transform_15(%arg0: i32) -> (i32, i32) {
    %c0_i32 = arith.constant 0 : i32
    %c0_i32_0 = arith.constant 0 : i32
    %c0_i32_1 = arith.constant 0 : i32
    return %c0_i32, %c0_i32_0 : i32, i32
  }
  func.func @transform_16(%arg0: i32) -> (i32, i32) {
    %c0_i32 = arith.constant 0 : i32
    %c0_i32_0 = arith.constant 0 : i32
    %c0_i32_1 = arith.constant 0 : i32
    return %c0_i32, %c0_i32_0 : i32, i32
  }
  func.func @transform_17(%arg0: i32) -> (i32, i32) {
    %c0_i32 = arith.constant 0 : i32
    %c0_i32_0 = arith.constant 0 : i32
    %c0_i32_1 = arith.constant 0 : i32
    return %c0_i32, %c0_i32_0 : i32, i32
  }
}

</mosaic_0001>

<bundles_post_ra>
// kernel: t5_encoder_forward.1
= control target key start
LH: loop header
LB: loop body
LE: loop exit
PB: predicated region body
PF: predicated region fallthrough
CT: control target
= control target key end

     0   :  { %s5290_s0 = inlined_call_operand.vmem [shape: s32[16,1], index: 0, kind: input, shape index: {}]   ;;  %s5291_s1 = inlined_call_operand.vmem [shape: f32[64,32], index: 1, kind: input, shape index: {}]   ;;  %s5292_s2 = inlined_call_operand.vmem [shape: f32[4,8,8], index: 2, kind: input, shape index: {}]   ;;  %s5293_s3 = inlined_call_operand.vmem [shape: f32[2,1,8], index: 3, kind: input, shape index: {}]   ;;  %s5294_s4 = inlined_call_operand.vmem [shape: f32[1,32], index: 4, kind: input, shape index: {}]   ;;  %s5295_s5 = inlined_call_operand.vmem [shape: f32[1,32], index: 5, kind: input, shape index: {}]   ;;  %s5296_s6 = inlined_call_operand.vmem [shape: f32[32,96], index: 6, kind: input, shape index: {}]   ;;  %s5297_s7 = inlined_call_operand.vmem [shape: f32[32,32], index: 7, kind: input, shape index: {}]   ;;  %s5298_s8 = inlined_call_operand.vmem [shape: f32[1,32], index: 8, kind: input, shape index: {}]   ;;  %s5299_s9 = inlined_call_operand.vmem [shape: f32[32,64], index: 9, kind: input, shape index: {}]   ;;  %s5300_s10 = inlined_call_operand.vmem [shape: f32[64,32], index: 10, kind: input, shape index: {}]   ;;  %s5301_s11 = inlined_call_operand.vmem [shape: f32[1,32], index: 11, kind: input, shape index: {}]   ;;  %s5302_s12 = inlined_call_operand.vmem [shape: f32[32,96], index: 12, kind: input, shape index: {}]   ;;  %s5303_s13 = inlined_call_operand.vmem [shape: f32[32,32], index: 13, kind: input, shape index: {}]   ;;  %s5304_s14 = inlined_call_operand.vmem [shape: f32[1,32], index: 14, kind: input, shape index: {}]   ;;  %s5305_s15 = inlined_call_operand.vmem [shape: f32[32,64], index: 15, kind: input, shape index: {}]   ;;  %s5306_s16 = inlined_call_operand.vmem [shape: f32[64,32], index: 16, kind: input, shape index: {}]   ;;  %s5307_s17 = inlined_call_operand.hbm [shape: f32[2,32], index: 17, kind: output, shape index: {}]  }
   0x1   :  { %5314 = sst [smem:[#allocation6_spill]] %s5290_s0 }
   0x2   :  { %5315 = sst [smem:[#allocation7_spill]] %s5291_s1 }
   0x3   :  { %5316 = sst [smem:[#allocation8_spill]] %s5294_s4 }
   0x4   :  { %s5317_s26 = sld [smem:[#allocation6_spill]]  ;;  %s5318_s4 = sld [smem:[#allocation7_spill]]  ;;  %v4523_v2 = vmov 0  }
   0x5   :  { %4414 = vset.pattern.permute.xlu0 %v4523_v2 }
   0xa   :  { %v57_v0 = vld [vmem:[%s5317_s26] sm:$0xff]  ;;  %v74_v3 = vld [vmem:[%s5318_s4 + $0x8] sm:$0xff]  ;;  %v75_v4 = vld [vmem:[%s5318_s4 + $0x10] sm:$0xff] }
   0xb   :  { %v73_v1 = vld [vmem:[%s5318_s4] sm:$0xff]  ;;  %v76_v5 = vld [vmem:[%s5318_s4 + $0x18] sm:$0xff]  ;;  %62 = vperm.xlu0 %4414, %v57_v0   ;;  %v58_v6 = vld [vmem:[%s5317_s26 + $0x8] sm:$0xff] }
   0xc   :  { %v4300_v7 = vpack.c.bf16 %v74_v3, %v73_v1  ;;  %v4304_v8 = vpack.c.bf16 %v76_v5, %v75_v4  ;;  %v77_v9 = vld [vmem:[%s5318_s4 + $0x20] sm:$0xff]  ;;  %v78_v10 = vld [vmem:[%s5318_s4 + $0x28] sm:$0xff] }
   0xd   :  { %22 = vsyncpa [#allocation4], 0  ;;  %v4308_v11 = vpack.c.bf16 %v78_v10, %v77_v9  ;;  %v79_v12 = vld [vmem:[%s5318_s4 + $0x30] sm:$0xff]  ;;  %v80_v13 = vld [vmem:[%s5318_s4 + $0x38] sm:$0xff]  ;;  %v4524_v15 = vmov 0.0   ;;  %v59_v16 = vlaneseq  ;;  %vm81_vm0 = vcmask 523264  }
   0xe   :  { %4301 = vmatprep.subr.bf16.mxu0 %v4300_v7  ;;  %v4312_v14 = vpack.c.bf16 %v80_v13, %v79_v12  ;;  %vm166_vm3 = vcmask 261120   ;;  %v190_v28 = vld [vmem:[%s5296_s6] sm:$0xff]  ;;  %v191_v29 = vld [vmem:[%s5296_s6 + $0x8] sm:$0xff]  ;;  %v192_v30 = vld [vmem:[%s5296_s6 + $0x10] sm:$0xff]  ;;  %vm4525_vm4 = vmmov 0   ;;  %s4528_s24 = smov 104  }
   0xf   :  { %4303 = vmatpush3.bf16.msra.mxu0 %v4300_v7  ;;  %65 = vperm.xlu0 %4414, %v58_v6   ;;  %v60_v17 = vand.u32 127, %v59_v16  ;;  %v4316_v31 = vpack.c.bf16 %v191_v29, %v190_v28  ;;  %v193_v32 = vld [vmem:[%s5296_s6 + $0x18] sm:$0xff]  ;;  %v3800_v41 = vld [vmem:[%s5295_s5] ss:$0 sm:$0xff]  ;;  %s4526_s5 = smov 88   ;;  %s4527_s6 = smov 96  }
  0x10   :  { %4305 = vmatprep.subr.bf16.mxu0 %v4304_v8  ;;  %v4320_v33 = vpack.c.bf16 %v193_v32, %v192_v30  ;;  %s4529_s25 = smov 120   ;;  %s4530_s27 = smov 80   ;;  %vm280_vm5 = vcmask 64512   ;;  %v4777_v0 = vld [vmem:[%s5292_s2] sm:$0xff]  ;;  %v4782_v1 = vld [vmem:[%s5292_s2 + $0x8] sm:$0xff]  ;;  %v4798_v13 = vld [vmem:[%s5292_s2 + $0x10] sm:$0xff] }
  0x11   :  { %4317 = vmatprep.subr.bf16.mxu1 %v4316_v31  ;;  %s4531_s28 = smov 112   ;;  %s4532_s26 = smov 72   ;;  %v4787_v3 = vld [vmem:[%s5293_s3] ss:$0 sm:$0xff]  ;;  %v4813_v28 = vld [vmem:[%s5293_s3 + $0x1] ss:$0 sm:$0xff] }
  0x12   :  { %4319 = vmatpush3.bf16.msra.mxu1 %v4316_v31  ;;  %s4533_s29 = smov 64   ;;  %s5312_s3 = smov 56   ;;  %vm622_vm6 = vcmask 130112   ;;  %vm796_vm7 = vcmask 195712   ;;  %vm970_vm8 = vcmask 261312   ;;  %vm3771_vm9 = vcmask 253952  }
  0x13   :  { %4307 = vmatpush3.bf16.msra.mxu0 %v4304_v8  ;;  %4321 = vmatprep.subr.bf16.mxu1 %v4320_v33  ;;  %s5310_s30 = smov 40   ;;  %s4537_s18 = smov 8  }
  0x14   :  { %4309 = vmatprep.subr.bf16.mxu0 %v4308_v11  ;;  %s4538_s19 = smov 16   ;;  %s4539_s1 = smov 24  }
  0x16   :  { %4323 = vmatpush3.bf16.msra.mxu1 %v4320_v33 }
  0x17   :  { %4311 = vmatpush3.bf16.msra.mxu0 %v4308_v11  ;;  %4047 = vmatprep.subr.mxu1 %v4524_v15 }
  0x18   :  { %4313 = vmatprep.subr.bf16.mxu0 %v4312_v14 }
  0x1b   :  { %4315 = vmatpush3.bf16.msra.mxu0 %v4312_v14 }
  0x1c   :  { %4057 = vmatprep.subr.mxu0 %v4524_v15 }
  0x8a   :  { %v63_v18 = vpop.permute.xlu0 %62 }
  0x8b   :  { %vm67_vm1 = vcmp.eq.s32.totalorder %v60_v17, %v63_v18 }
  0x8c   :  { %v3796_v19 = vsel %vm67_vm1, 1.0, %v4524_v15 }
  0x8d   :  { %4033 = vmatprep.mubr.msk.f32.mxu0 %vm81_vm0, %v3796_v19 }
  0x8e   :  { %v66_v20 = vpop.permute.xlu0 %65 }
  0x8f   :  { %vm68_vm2 = vcmp.eq.s32.totalorder %v60_v17, %v66_v20  ;;  %v4806_v20 = vld [vmem:[%s5292_s2 + $0x18] sm:$0xff]  ;;  %s4534_s2 = smov 48  }
  0x90   :  { %v3797_v21 = vsel %vm68_vm2, 1.0, %v4524_v15 }
  0x91   :  { %4034 = vmatmul.mubr.msk.f32.vlgmr.msra.gmra.mrb[0].mxu0 %vm81_vm0, %v3797_v21 }
  0x92   :  { %4059 = vmatprep.mubr.msk.f32.mxu0 %vm4525_vm4, %v4524_v15 }
 0x164   :  { %v4666_v22 = vpop.f32.mrb[0].mxu0 }
 0x165   :  { %v4668_v23 = vpop.f32.mrb[1].mxu0  ;;  %v165_v26 = vmul.f32 %v4666_v22, %v4666_v22 }
 0x166   :  { %v164_v24 = vmul.f32 %v4668_v23, %v4668_v23 }
 0x167   :  { %v170_v27 = vsel %vm166_vm3, %v165_v26, 0.0 }
 0x168   :  { %v167_v25 = vsel %vm166_vm3, %v164_v24, 0.0 }
 0x169   :  { %168 = vadd.xlane.f32.xlu1 %v167_v25 }
 0x16d   :  { %171 = vadd.xlane.f32.xlu1 %v170_v27 }
 0x1f6   :  { %v169_v34 = vpop.xlane.xlu1 %168 }
 0x1f7   :  { %v174_v35 = vmul.f32 0.03125, %v169_v34 }
 0x1f9   :  { %v176_v36 = vadd.f32 1e-06, %v174_v35 }
 0x1fa   :  { %v172_v37 = vpop.xlane.xlu1 %171 }
 0x1fb   :  { %4415 = vrsqrt.f32 %v176_v36  ;;  %v175_v38 = vmul.f32 0.03125, %v172_v37 }
 0x1fd   :  { %v177_v39 = vadd.f32 1e-06, %v175_v38 }
 0x1ff   :  { %4417 = vrsqrt.f32 %v177_v39 }
 0x205   :  { %v4416_v40 = vpop.eup %4415 }
 0x206   :  { %v180_v42 = vmul.f32 %v4416_v40, %v4668_v23 }
 0x208   :  { %v188_v43 = vmul.f32 %v3800_v41, %v180_v42 }
 0x209   :  { %v4418_v44 = vpop.eup %4417 }
 0x20a   :  { %v181_v45 = vmul.f32 %v4418_v44, %v4666_v22  ;;  %4044 = vmatprep.mubr.msk.f32.mxu1 %vm166_vm3, %v188_v43 }
 0x20c   :  { %v189_v46 = vmul.f32 %v3800_v41, %v181_v45 }
 0x20e   :  { %4045 = vmatmul.mubr.msk.f32.vlgmr.msra.gmra.mrb[0].mxu1 %vm166_vm3, %v189_v46 }
 0x20f   :  { %4049 = vmatprep.mubr.msk.f32.mxu1 %vm4525_vm4, %v4524_v15 }
 0x2e1   :  { %v4700_v47 = vpop.f32.mrb[0].mxu1 }
 0x2e2   :  { %v4702_v48 = vpop.f32.mrb[1].mxu1 }
 0x2e3   :  { %454 = vrot.lane.b32.xlu1 %v4702_v48, %s4526_s5  ;;  %278 = vrot.lane.b32.xlu0 %v4702_v48, %s4527_s6 }
 0x2e7   :  { %800 = vrot.lane.b32.xlu1 %v4702_v48, %s4528_s24  ;;  %452 = vrot.lane.b32.xlu0 %v4702_v48, %s4529_s25 }
 0x2eb   :  { %1150 = vrot.lane.b32.xlu1 %v4700_v47, %s4526_s5  ;;  %628 = vrot.lane.b32.xlu0 %v4702_v48, %s4530_s27 }
 0x2ef   :  { %1322 = vrot.lane.b32.xlu1 %v4700_v47, %s4530_s27  ;;  %626 = vrot.lane.b32.xlu0 %v4702_v48, %s4531_s28 }
 0x2f3   :  { %1494 = vrot.lane.b32.xlu1 %v4700_v47, %s4532_s26  ;;  %802 = vrot.lane.b32.xlu0 %v4702_v48, %s4532_s26 }
 0x2f7   :  { %373 = vrot.lane.b32.xlu1 %v4702_v48, %s4533_s29  ;;  %976 = vrot.lane.b32.xlu0 %v4700_v47, %s4527_s6 }
 0x2fb   :  { %1148 = vrot.lane.b32.xlu0 %v4700_v47, %s4529_s25 }
 0x2ff   :  { %1320 = vrot.lane.b32.xlu0 %v4700_v47, %s4531_s28 }
 0x303   :  { %1492 = vrot.lane.b32.xlu0 %v4700_v47, %s4528_s24 }
 0x355   :  { %v455_v49 = vpop.permute.xlu1 %454  ;;  %v279_v50 = vpop.permute.xlu0 %278 }
 0x356   :  { %4048 = vmatpush3.xpose.msk.msra.mxu1 %vm280_vm5, %v279_v50  ;;  %4058 = vmatpush3.xpose.msk.msra.mxu0 %vm280_vm5, %v455_v49 }
 0x357   :  { %4067 = vmatprep.subr.mxu0 %v4524_v15  ;;  %4052 = vmatprep.subr.mxu1 %v4524_v15 }
 0x359   :  { %v801_v51 = vpop.permute.xlu1 %800  ;;  %4050 = vmatmul.mubr.msk.f32.vlgmr.msra.gmra.mrb[2].mxu1 %vm280_vm5, %v4702_v48  ;;  %v453_v52 = vpop.permute.xlu0 %452 }
 0x35a   :  { %4060 = vmatmul.mubr.msk.f32.vlgmr.msra.gmra.mrb[2].mxu0 %vm280_vm5, %v453_v52  ;;  %4054 = vmatprep.mubr.msk.f32.mxu1 %vm4525_vm4, %v4524_v15 }
 0x35b   :  { %4069 = vmatprep.mubr.msk.f32.mxu0 %vm4525_vm4, %v4524_v15 }
 0x35d   :  { %v1151_v53 = vpop.permute.xlu1 %1150  ;;  %v629_v54 = vpop.permute.xlu0 %628 }
 0x35e   :  { %4068 = vmatpush3.xpose.msk.msra.mxu0 %vm280_vm5, %v629_v54 }
 0x35f   :  { %4077 = vmatprep.subr.mxu0 %v4524_v15 }
 0x361   :  { %v1323_v55 = vpop.permute.xlu1 %1322  ;;  %v627_v56 = vpop.permute.xlu0 %626 }
 0x362   :  { %4070 = vmatmul.mubr.msk.f32.vlgmr.msra.gmra.mrb[4].mxu0 %vm280_vm5, %v627_v56 }
 0x363   :  { %4079 = vmatprep.mubr.msk.f32.mxu0 %vm4525_vm4, %v4524_v15 }
 0x365   :  { %v1495_v57 = vpop.permute.xlu1 %1494  ;;  %v803_v58 = vpop.permute.xlu0 %802 }
 0x366   :  { %4078 = vmatpush3.xpose.msk.msra.mxu0 %vm280_vm5, %v803_v58 }
 0x367   :  { %4087 = vmatprep.subr.mxu0 %v4524_v15 }
 0x369   :  { %v374_v59 = vpop.permute.xlu1 %373  ;;  %4080 = vmatmul.mubr.msk.f32.vlgmr.msra.gmra.mrb[6].mxu0 %vm280_vm5, %v801_v51  ;;  %v977_v60 = vpop.permute.xlu0 %976 }
 0x36a   :  { %4053 = vmatpush3.msra.mxu1 %v374_v59  ;;  %4088 = vmatpush3.xpose.msk.msra.mxu0 %vm280_vm5, %v977_v60 }
 0x36b   :  { %4089 = vmatprep.mubr.msk.f32.mxu0 %vm4525_vm4, %v4524_v15  ;;  %4097 = vmatprep.subr.mxu0 %v4524_v15 }
 0x36c   :  { %4062 = vmatprep.subr.mxu1 %v4524_v15 }
 0x36d   :  { %4090 = vmatmul.mubr.msk.f32.vlgmr.msra.gmra.mrb[8].mxu0 %vm280_vm5, %v4700_v47  ;;  %v1149_v61 = vpop.permute.xlu0 %1148 }
 0x36e   :  { %4098 = vmatpush3.xpose.msk.msra.mxu0 %vm280_vm5, %v1151_v53  ;;  %4099 = vmatprep.mubr.msk.f32.mxu0 %vm4525_vm4, %v4524_v15 }
 0x36f   :  { %4107 = vmatprep.subr.mxu0 %v4524_v15 }
 0x371   :  { %4100 = vmatmul.mubr.msk.f32.vlgmr.msra.gmra.mrb[10].mxu0 %vm280_vm5, %v1149_v61  ;;  %v1321_v62 = vpop.permute.xlu0 %1320 }
 0x372   :  { %4108 = vmatpush3.xpose.msk.msra.mxu0 %vm280_vm5, %v1323_v55  ;;  %4109 = vmatprep.mubr.msk.f32.mxu0 %vm4525_vm4, %v4524_v15 }
 0x373   :  { %4117 = vmatprep.subr.mxu0 %v4524_v15 }
 0x375   :  { %4110 = vmatmul.mubr.msk.f32.vlgmr.msra.gmra.mrb[12].mxu0 %vm280_vm5, %v1321_v62  ;;  %v1493_v63 = vpop.permute.xlu0 %1492 }
 0x376   :  { %4118 = vmatpush3.xpose.msk.msra.mxu0 %vm280_vm5, %v1495_v57  ;;  %4119 = vmatprep.mubr.msk.f32.mxu0 %vm4525_vm4, %v4524_v15 }
 0x379   :  { %4120 = vmatmul.mubr.msk.f32.vlgmr.msra.gmra.mrb[14].mxu0 %vm280_vm5, %v1493_v63 }
 0x42c   :  { %v351_v2 = vpop.f32.mrb[2].mxu1 }
 0x42d   :  { %v352_v4 = vadd.f32 %v351_v2, %v4777_v0  ;;  %v4051_v5 = vpop.f32.mrb[3].mxu1  ;;  %v526_v6 = vpop.f32.mrb[2].mxu0 }
 0x42e   :  { %v527_v7 = vadd.f32 %v4782_v1, %v526_v6  ;;  %v4061_v8 = vpop.f32.mrb[3].mxu0 }
 0x42f   :  { %v361_v9 = vadd.f32 %v4787_v3, %v352_v4 }
 0x430   :  { %v530_v10 = vadd.f32 %v4787_v3, %v527_v7 }
 0x431   :  { %v362_v11 = vsel %vm280_vm5, %v361_v9, -inf }
 0x432   :  { %363 = vmax.xlane.f32.xlu1 %v362_v11  ;;  %v531_v12 = vsel %vm280_vm5, %v530_v10, -inf }
 0x433   :  { %532 = vmax.xlane.f32.xlu0 %v531_v12 }
 0x435   :  { %v700_v14 = vpop.f32.mrb[4].mxu0 }
 0x436   :  { %v701_v16 = vadd.f32 %v4798_v13, %v700_v14  ;;  %v4071_v17 = vpop.f32.mrb[5].mxu0 }
 0x438   :  { %v704_v18 = vadd.f32 %v4787_v3, %v701_v16 }
 0x43a   :  { %v705_v19 = vsel %vm280_vm5, %v704_v18, -inf }
 0x43b   :  { %706 = vmax.xlane.f32.xlu0 %v705_v19 }
 0x43c   :  { %v874_v21 = vpop.f32.mrb[6].mxu0 }
 0x43d   :  { %v875_v24 = vadd.f32 %v4806_v20, %v874_v21  ;;  %v4081_v25 = vpop.f32.mrb[7].mxu0 }
 0x43f   :  { %v878_v26 = vadd.f32 %v4787_v3, %v875_v24 }
 0x440   :  { %v1048_v27 = vpop.f32.mrb[8].mxu0 }
 0x441   :  { %v1049_v29 = vadd.f32 %v1048_v27, %v4777_v0  ;;  %v4091_v30 = vpop.f32.mrb[9].mxu0  ;;  %v879_v31 = vsel %vm280_vm5, %v878_v26, -inf }
 0x442   :  { %880 = vmax.xlane.f32.xlu1 %v879_v31 }
 0x443   :  { %v1058_v32 = vadd.f32 %v4813_v28, %v1049_v29 }
 0x444   :  { %v1222_v33 = vpop.f32.mrb[10].mxu0 }
 0x445   :  { %v1223_v34 = vadd.f32 %v4782_v1, %v1222_v33  ;;  %v4101_v35 = vpop.f32.mrb[11].mxu0  ;;  %v1059_v36 = vsel %vm280_vm5, %v1058_v32, -inf }
 0x446   :  { %1060 = vmax.xlane.f32.xlu0 %v1059_v36 }
 0x447   :  { %v1226_v37 = vadd.f32 %v4813_v28, %v1223_v34 }
 0x448   :  { %v1394_v38 = vpop.f32.mrb[12].mxu0 }
 0x449   :  { %v1395_v39 = vadd.f32 %v4798_v13, %v1394_v38  ;;  %v4111_v40 = vpop.f32.mrb[13].mxu0  ;;  %v1227_v41 = vsel %vm280_vm5, %v1226_v37, -inf }
 0x44a   :  { %1228 = vmax.xlane.f32.xlu1 %v1227_v41 }
 0x44b   :  { %v1398_v42 = vadd.f32 %v4813_v28, %v1395_v39 }
 0x44c   :  { %v1566_v43 = vpop.f32.mrb[14].mxu0 }
 0x44d   :  { %v4121_v44 = vpop.f32.mrb[15].mxu0  ;;  %v1399_v45 = vsel %vm280_vm5, %v1398_v42, -inf  ;;  %v1567_v46 = vadd.f32 %v4806_v20, %v1566_v43 }
 0x44e   :  { %1400 = vmax.xlane.f32.xlu0 %v1399_v45 }
 0x44f   :  { %v1570_v49 = vadd.f32 %v4813_v28, %v1567_v46 }
 0x451   :  { %v1571_v50 = vsel %vm280_vm5, %v1570_v49, -inf }
 0x45b   :  { %716 = vrot.lane.b32.xlu1 %v4702_v48, %s4534_s2 }
 0x464   :  { %542 = vrot.lane.b32.xlu0 %v4702_v48, %s5312_s3 }
 0x47f   :  { %1572 = vmax.xlane.f32.xlu1 %v1571_v50 }
 0x490   :  { %890 = vrot.lane.b32.xlu1 %v4702_v48, %s5310_s30 }
 0x4bf   :  { %v364_v51 = vpop.xlane.xlu1 %363 }
 0x4c0   :  { %v365_v52 = vsub.f32 %v361_v9, %v364_v51  ;;  %v533_v53 = vpop.xlane.xlu0 %532 }
 0x4c1   :  { %v534_v54 = vsub.f32 %v530_v10, %v533_v53 }
 0x4c2   :  { %v366_v55 = vmul.f32 1.442695, %v365_v52 }
 0x4c3   :  { %v535_v56 = vmul.f32 1.442695, %v534_v54 }
 0x4c4   :  { %4419 = vpow2.f32 %v366_v55 }
 0x4c5   :  { %4421 = vpow2.f32 %v535_v56 }
 0x4c8   :  { %v707_v57 = vpop.xlane.xlu0 %706 }
 0x4c9   :  { %v708_v58 = vsub.f32 %v704_v18, %v707_v57 }
 0x4cb   :  { %v709_v59 = vmul.f32 1.442695, %v708_v58 }
 0x4cd   :  { %4423 = vpow2.f32 %v709_v59 }
 0x4ce   :  { %v4420_v60 = vpop.eup %4419 }
 0x4cf   :  { %v4422_v61 = vpop.eup %4421  ;;  %v368_v62 = vsel %vm280_vm5, %v4420_v60, 0.0  ;;  %v881_v4 = vpop.xlane.xlu1 %880 }
 0x4d0   :  { %369 = vadd.xlane.f32.xlu0 %v368_v62  ;;  %v537_v63 = vsel %vm280_vm5, %v4422_v61, 0.0  ;;  %v882_v5 = vsub.f32 %v878_v26, %v881_v4 }
 0x4d1   :  { %538 = vadd.xlane.f32.xlu1 %v537_v63 }
 0x4d2   :  { %v883_v7 = vmul.f32 1.442695, %v882_v5 }
 0x4d3   :  { %v1061_v9 = vpop.xlane.xlu0 %1060 }
 0x4d4   :  { %4425 = vpow2.f32 %v883_v7  ;;  %v1062_v10 = vsub.f32 %v1058_v32, %v1061_v9 }
 0x4d6   :  { %v1063_v14 = vmul.f32 1.442695, %v1062_v10 }
 0x4d7   :  { %v4836_v48 = vpop.eup %4423  ;;  %v1229_v6 = vpop.xlane.xlu1 %1228 }
 0x4d8   :  { %v711_v2 = vsel %vm280_vm5, %v4836_v48, 0.0  ;;  %v1230_v8 = vsub.f32 %v1226_v37, %v1229_v6 }
 0x4d9   :  { %712 = vadd.xlane.f32.xlu0 %v711_v2 }
 0x4da   :  { %v1231_v11 = vmul.f32 1.442695, %v1230_v8 }
 0x4db   :  { %v1401_v12 = vpop.xlane.xlu0 %1400  ;;  %v717_v24 = vpop.permute.xlu1 %716 }
 0x4dc   :  { %4427 = vpow2.f32 %v1231_v11  ;;  %v1402_v16 = vsub.f32 %v1398_v42, %v1401_v12 }
 0x4dd   :  { %4429 = vpow2.f32 %v1063_v14 }
 0x4de   :  { %v1403_v17 = vmul.f32 1.442695, %v1402_v16  ;;  %v4426_v18 = vpop.eup %4425 }
 0x4df   :  { %v885_v19 = vsel %vm280_vm5, %v4426_v18, 0.0  ;;  %v543_v36 = vpop.permute.xlu0 %542 }
 0x4e0   :  { %4431 = vpow2.f32 %v1403_v17  ;;  %v1665_v17 = vld [vmem:[%s5297_s7] sm:$0xff] }
 0x4e2   :  { %1070 = vrot.lane.b32.xlu1 %v4700_v47, %s4533_s29 }
 0x4e6   :  { %v4845_v21 = vpop.eup %4427 }
 0x4e7   :  { %v1233_v25 = vsel %vm280_vm5, %v4845_v21, 0.0  ;;  %v4430_v26 = vpop.eup %4429 }
 0x4e8   :  { %v1065_v30 = vsel %vm280_vm5, %v4430_v26, 0.0 }
 0x4ea   :  { %v4850_v31 = vpop.eup %4431 }
 0x4eb   :  { %v1405_v33 = vsel %vm280_vm5, %v4850_v31, 0.0 }
 0x4ef   :  { %1238 = vrot.lane.b32.xlu0 %v4700_v47, %s5312_s3 }
 0x506   :  { %886 = vadd.xlane.f32.xlu1 %v885_v19 }
 0x50a   :  { %1234 = vadd.xlane.f32.xlu1 %v1233_v25 }
 0x50c   :  { %v1573_v27 = vpop.xlane.xlu1 %1572 }
 0x50d   :  { %v1574_v29 = vsub.f32 %v1570_v49, %v1573_v27 }
 0x50e   :  { %1066 = vadd.xlane.f32.xlu0 %v1065_v30 }
 0x50f   :  { %v1575_v32 = vmul.f32 1.442695, %v1574_v29 }
 0x510   :  { %v891_v37 = vpop.permute.xlu1 %890 }
 0x511   :  { %4433 = vpow2.f32 %v1575_v32 }
 0x512   :  { %1406 = vadd.xlane.f32.xlu0 %v1405_v33 }
 0x51b   :  { %v4854_v34 = vpop.eup %4433  ;;  %1410 = vrot.lane.b32.xlu1 %v4700_v47, %s4534_s2 }
 0x51c   :  { %v1577_v35 = vsel %vm280_vm5, %v4854_v34, 0.0 }
 0x51d   :  { %1578 = vadd.xlane.f32.xlu0 %v1577_v35 }
 0x533   :  { %1582 = vrot.lane.b32.xlu0 %v4700_v47, %s5310_s30 }
 0x55d   :  { %v370_v38 = vpop.xlane.xlu0 %369 }
 0x55e   :  { %4435 = vrcp.f32 %v370_v38  ;;  %v539_v39 = vpop.xlane.xlu1 %538 }
 0x55f   :  { %4437 = vrcp.f32 %v539_v39 }
 0x562   :  { %v1071_v46 = vpop.permute.xlu1 %1070 }
 0x566   :  { %v713_v40 = vpop.xlane.xlu0 %712 }
 0x567   :  { %4439 = vrcp.f32 %v713_v40 }
 0x568   :  { %v4436_v41 = vpop.eup %4435 }
 0x569   :  { %v372_v42 = vmul.f32 %v4436_v41, %v4420_v60  ;;  %v4438_v43 = vpop.eup %4437 }
 0x56a   :  { %v541_v44 = vmul.f32 %v4438_v43, %v4422_v61  ;;  %v1239_v50 = vpop.permute.xlu0 %1238 }
 0x56b   :  { %4055 = vmatmul.mubr.msk.f32.vlgmr.msra.gmra.mrb[4].mxu1 %vm280_vm5, %v372_v42 }
 0x56c   :  { %4063 = vmatpush3.msra.mxu1 %v543_v36  ;;  %4064 = vmatprep.mubr.msk.f32.mxu1 %vm4525_vm4, %v4524_v15 }
 0x56d   :  { %4072 = vmatprep.subr.mxu1 %v4524_v15 }
 0x56f   :  { %4065 = vmatmul.mubr.msk.f32.vlgmr.msra.gmra.mrb[6].mxu1 %vm280_vm5, %v541_v44 }
 0x570   :  { %4073 = vmatpush3.msra.mxu1 %v717_v24  ;;  %4074 = vmatprep.mubr.msk.f32.mxu1 %vm4525_vm4, %v4524_v15  ;;  %v1668_v24 = vld [vmem:[%s5297_s7 + $0x18] sm:$0xff] }
 0x571   :  { %v4440_v47 = vpop.eup %4439  ;;  %4082 = vmatprep.subr.mxu1 %v4524_v15 }
 0x572   :  { %v715_v45 = vmul.f32 %v4440_v47, %v4836_v48 }
 0x574   :  { %4075 = vmatmul.mubr.msk.f32.vlgmr.msra.gmra.mrb[8].mxu1 %vm280_vm5, %v715_v45 }
 0x575   :  { %4083 = vmatpush3.msra.mxu1 %v891_v37  ;;  %4084 = vmatprep.mubr.msk.f32.mxu1 %vm4525_vm4, %v4524_v15 }
 0x576   :  { %4092 = vmatprep.subr.mxu1 %v4524_v15 }
 0x593   :  { %v887_v49 = vpop.xlane.xlu1 %886 }
 0x594   :  { %4441 = vrcp.f32 %v887_v49 }
 0x597   :  { %v1235_v51 = vpop.xlane.xlu1 %1234 }
 0x59b   :  { %v1067_v52 = vpop.xlane.xlu0 %1066  ;;  %v1411_v62 = vpop.permute.xlu1 %1410 }
 0x59c   :  { %4443 = vrcp.f32 %v1067_v52  ;;  %v1780_v52 = vld [vmem:[%s5299_s9 + $0x18] sm:$0xff] }
 0x59d   :  { %4445 = vrcp.f32 %v1235_v51 }
 0x59e   :  { %v4442_v53 = vpop.eup %4441 }
 0x59f   :  { %v889_v54 = vmul.f32 %v4442_v53, %v4426_v18  ;;  %v1407_v55 = vpop.xlane.xlu0 %1406  ;;  %v1666_v18 = vld [vmem:[%s5297_s7 + $0x8] sm:$0xff] }
 0x5a0   :  { %4447 = vrcp.f32 %v1407_v55  ;;  %v4324_v19 = vpack.c.bf16 %v1666_v18, %v1665_v17  ;;  %v1865_v55 = vld [vmem:[%s5300_s10 + $0x8] sm:$0xff]  ;;  %v1871_v17 = vld [vmem:[%s5300_s10 + $0x38] sm:$0xff] }
 0x5a1   :  { %4085 = vmatmul.mubr.msk.f32.vlgmr.msra.gmra.mrb[10].mxu1 %vm280_vm5, %v889_v54  ;;  %v1864_v54 = vld [vmem:[%s5300_s10] sm:$0xff] }
 0x5a2   :  { %4093 = vmatpush3.msra.mxu1 %v1071_v46  ;;  %4094 = vmatprep.mubr.msk.f32.mxu1 %vm4525_vm4, %v4524_v15 }
 0x5a3   :  { %4102 = vmatprep.subr.mxu1 %v4524_v15 }
 0x5a6   :  { %v4444_v56 = vpop.eup %4443 }
 0x5a7   :  { %v1069_v57 = vmul.f32 %v4444_v56, %v4430_v26  ;;  %v4446_v58 = vpop.eup %4445  ;;  %v1866_v56 = vld [vmem:[%s5300_s10 + $0x10] sm:$0xff] }
 0x5a8   :  { %v1237_v60 = vmul.f32 %v4446_v58, %v4845_v21  ;;  %v1667_v21 = vld [vmem:[%s5297_s7 + $0x10] sm:$0xff]  ;;  %v1867_v58 = vld [vmem:[%s5300_s10 + $0x18] sm:$0xff] }
 0x5a9   :  { %4095 = vmatmul.mubr.msk.f32.vlgmr.msra.gmra.mrb[12].mxu1 %vm280_vm5, %v1069_v57  ;;  %v4328_v26 = vpack.c.bf16 %v1668_v24, %v1667_v21  ;;  %v4340_v57 = vpack.c.bf16 %v1865_v55, %v1864_v54 }
 0x5aa   :  { %4103 = vmatpush3.msra.mxu1 %v1239_v50  ;;  %v1579_v59 = vpop.xlane.xlu0 %1578  ;;  %4104 = vmatprep.mubr.msk.f32.mxu1 %vm4525_vm4, %v4524_v15  ;;  %v4448_v61 = vpop.eup %4447  ;;  %v1779_v50 = vld [vmem:[%s5299_s9 + $0x10] sm:$0xff] }
 0x5ab   :  { %4449 = vrcp.f32 %v1579_v59  ;;  %4112 = vmatprep.subr.mxu1 %v4524_v15  ;;  %v1409_v63 = vmul.f32 %v4448_v61, %v4850_v31  ;;  %v4336_v53 = vpack.c.bf16 %v1780_v52, %v1779_v50  ;;  %v4344_v59 = vpack.c.bf16 %v1867_v58, %v1866_v56  ;;  %v1869_v61 = vld [vmem:[%s5300_s10 + $0x28] sm:$0xff]  ;;  %4341 = vmatprep.subr.bf16.mxu0 %v4340_v57 }
 0x5ac   :  { %4343 = vmatpush3.bf16.msra.mxu0 %v4340_v57 }
 0x5ad   :  { %4105 = vmatmul.mubr.msk.f32.vlgmr.msra.gmra.mrb[14].mxu1 %vm280_vm5, %v1237_v60  ;;  %v1868_v60 = vld [vmem:[%s5300_s10 + $0x20] sm:$0xff]  ;;  %4345 = vmatprep.subr.bf16.mxu0 %v4344_v59 }
 0x5ae   :  { %4113 = vmatpush3.msra.mxu1 %v1411_v62  ;;  %4114 = vmatprep.mubr.msk.f32.mxu1 %vm4525_vm4, %v4524_v15  ;;  %v1583_v48 = vpop.permute.xlu0 %1582  ;;  %v4348_v62 = vpack.c.bf16 %v1869_v61, %v1868_v60 }
 0x5af   :  { %4122 = vmatprep.subr.mxu1 %v4524_v15 }
 0x5b0   :  { %4347 = vmatpush3.bf16.msra.mxu0 %v4344_v59 }
 0x5b1   :  { %4115 = vmatmul.mubr.msk.f32.vlgmr.msra.gmra.mrb[16].mxu1 %vm280_vm5, %v1409_v63  ;;  %4349 = vmatprep.subr.bf16.mxu0 %v4348_v62 }
 0x5b2   :  { %4123 = vmatpush3.msra.mxu1 %v1583_v48  ;;  %4124 = vmatprep.mubr.msk.f32.mxu1 %vm4525_vm4, %v4524_v15 }
 0x5b3   :  { %4325 = vmatprep.subr.bf16.mxu1 %v4324_v19 }
 0x5b4   :  { %4351 = vmatpush3.bf16.msra.mxu0 %v4348_v62 }
 0x5b5   :  { %v4450_v2 = vpop.eup %4449 }
 0x5b6   :  { %v1581_v4 = vmul.f32 %v4450_v2, %v4854_v34 }
 0x5b8   :  { %4125 = vmatmul.mubr.msk.f32.vlgmr.msra.gmra.mrb[18].mxu1 %vm280_vm5, %v1581_v4 }
 0x5b9   :  { %4327 = vmatpush3.bf16.msra.mxu1 %v4324_v19 }
 0x5ba   :  { %4329 = vmatprep.subr.bf16.mxu1 %v4328_v26 }
 0x5bd   :  { %4331 = vmatpush3.bf16.msra.mxu1 %v4328_v26 }
 0x63e   :  { %v445_v5 = vpop.f32.mrb[4].mxu1 }
 0x63f   :  { %449 = vst.msk [vmem:[#allocation2] sm:$0xff] %vm280_vm5, %v445_v5  ;;  %v4056_v6 = vpop.f32.mrb[5].mxu1 }
 0x642   :  { %v614_v7 = vpop.f32.mrb[6].mxu1 }
 0x643   :  { %619 = vrot.lane.b32.xlu1 %v614_v7, %s4537_s18  ;;  %v4066_v8 = vpop.f32.mrb[7].mxu1 }
 0x647   :  { %v788_v9 = vpop.f32.mrb[8].mxu1 }
 0x648   :  { %793 = vrot.lane.b32.xlu0 %v788_v9, %s4538_s19  ;;  %v4076_v10 = vpop.f32.mrb[9].mxu1  ;;  %v3838_v9 = vld [vmem:[%s5298_s8] ss:$0 sm:$0xff] }
 0x674   :  { %v962_v11 = vpop.f32.mrb[10].mxu1 }
 0x675   :  { %967 = vrot.lane.b32.xlu0 %v962_v11, %s4539_s1  ;;  %v4086_v12 = vpop.f32.mrb[11].mxu1 }
 0x67c   :  { %v1142_v14 = vpop.f32.mrb[12].mxu1 }
 0x67d   :  { %1146 = vst.msk [vmem:[#allocation2 + $0x8] sm:$0xff] %vm280_vm5, %v1142_v14  ;;  %v4096_v16 = vpop.f32.mrb[13].mxu1 }
 0x67e   :  { %v1870_v16 = vld [vmem:[%s5300_s10 + $0x30] sm:$0xff] }
 0x67f   :  { %v4352_v18 = vpack.c.bf16 %v1871_v17, %v1870_v16 }
 0x680   :  { %v1310_v25 = vpop.f32.mrb[14].mxu1 }
 0x681   :  { %1315 = vrot.lane.b32.xlu1 %v1310_v25, %s4537_s18  ;;  %v4106_v27 = vpop.f32.mrb[15].mxu1  ;;  %4353 = vmatprep.subr.bf16.mxu0 %v4352_v18 }
 0x682   :  { %4355 = vmatpush3.bf16.msra.mxu0 %v4352_v18 }
 0x683   :  { %4189 = vmatprep.subr.mxu0 %v4524_v15 }
 0x684   :  { %v1482_v29 = vpop.f32.mrb[16].mxu1 }
 0x685   :  { %1487 = vrot.lane.b32.xlu1 %v1482_v29, %s4538_s19  ;;  %v4116_v30 = vpop.f32.mrb[17].mxu1 }
 0x68b   :  { %v1654_v31 = vpop.f32.mrb[18].mxu1 }
 0x68c   :  { %1659 = vrot.lane.b32.xlu0 %v1654_v31, %s4539_s1  ;;  %v4126_v32 = vpop.f32.mrb[19].mxu1 }
 0x6b5   :  { %v620_v33 = vpop.permute.xlu1 %619 }
 0x6b6   :  { %623 = vst.msk [vmem:[#allocation2] sm:$0xff] %vm622_vm6, %v620_v33 }
 0x6ba   :  { %v794_v34 = vpop.permute.xlu0 %793 }
 0x6bb   :  { %797 = vst.msk [vmem:[#allocation2] sm:$0xff] %vm796_vm7, %v794_v34 }
 0x6e7   :  { %v968_v35 = vpop.permute.xlu0 %967 }
 0x6e8   :  { %971 = vst.msk [vmem:[#allocation2] sm:$0xff] %vm970_vm8, %v968_v35  ;;  %v1980_v35 = vld [vmem:[%s5302_s12] sm:$0xff] }
 0x6ef   :  { %v1663_v36 = vld [vmem:[#allocation2] sm:$0xff] }
 0x6f0   :  { %4135 = vmatprep.mubr.msk.f32.mxu1 %vm166_vm3, %v1663_v36  ;;  %v1981_v36 = vld [vmem:[%s5302_s12 + $0x8] sm:$0xff] }
 0x6f3   :  { %v1316_v37 = vpop.permute.xlu1 %1315 }
 0x6f4   :  { %1318 = vst.msk [vmem:[#allocation2 + $0x8] sm:$0xff] %vm622_vm6, %v1316_v37  ;;  %v1982_v37 = vld [vmem:[%s5302_s12 + $0x10] sm:$0xff] }
 0x6f7   :  { %v1488_v38 = vpop.permute.xlu1 %1487 }
 0x6f8   :  { %1490 = vst.msk [vmem:[#allocation2 + $0x8] sm:$0xff] %vm796_vm7, %v1488_v38  ;;  %v4356_v38 = vpack.c.bf16 %v1981_v36, %v1980_v35 }
 0x6fe   :  { %v1660_v39 = vpop.permute.xlu0 %1659 }
 0x6ff   :  { %1662 = vst.msk [vmem:[#allocation2 + $0x8] sm:$0xff] %vm970_vm8, %v1660_v39  ;;  %v1983_v39 = vld [vmem:[%s5302_s12 + $0x18] sm:$0xff]  ;;  %s5320_s12 = smov 40  }
 0x706   :  { %v1664_v40 = vld [vmem:[#allocation2 + $0x8] sm:$0xff] }
 0x707   :  { %4136 = vmatmul.mubr.msk.f32.vlgmr.msra.gmra.mrb[20].mxu1 %vm166_vm3, %v1664_v40  ;;  %v4360_v40 = vpack.c.bf16 %v1983_v39, %v1982_v37 }
 0x7da   :  { %v4137_v41 = vpop.f32.mrb[20].mxu1 }
 0x7db   :  { %v4923_v42 = vadd.f32 %v4137_v41, %v4666_v22  ;;  %v1741_v43 = vpop.f32.mrb[21].mxu1  ;;  %v1777_v22 = vld [vmem:[%s5299_s9] sm:$0xff] }
 0x7dc   :  { %v4926_v44 = vadd.f32 %v1741_v43, %v4668_v23  ;;  %v1778_v23 = vld [vmem:[%s5299_s9 + $0x8] sm:$0xff] }
 0x7dd   :  { %v1754_v47 = vmul.f32 %v4923_v42, %v4923_v42  ;;  %v4332_v51 = vpack.c.bf16 %v1778_v23, %v1777_v22  ;;  %v3843_v22 = vld [vmem:[%s5301_s11] ss:$0 sm:$0xff]  ;;  %s5319_s11 = smov 56  }
 0x7de   :  { %v1753_v45 = vmul.f32 %v4926_v44, %v4926_v44 }
 0x7df   :  { %v1758_v46 = vsel %vm166_vm3, %v1754_v47, 0.0  ;;  %4333 = vmatprep.subr.bf16.mxu1 %v4332_v51 }
 0x7e0   :  { %1759 = vadd.xlane.f32.xlu0 %v1758_v46  ;;  %v1755_v49 = vsel %vm166_vm3, %v1753_v45, 0.0  ;;  %4335 = vmatpush3.bf16.msra.mxu1 %v4332_v51 }
 0x7e1   :  { %1756 = vadd.xlane.f32.xlu1 %v1755_v49  ;;  %4337 = vmatprep.subr.bf16.mxu1 %v4336_v53 }
 0x7e4   :  { %4339 = vmatpush3.bf16.msra.mxu1 %v4336_v53 }
 0x7e5   :  { %4357 = vmatprep.subr.bf16.mxu1 %v4356_v38 }
 0x86d   :  { %v1760_v63 = vpop.xlane.xlu0 %1759 }
 0x86e   :  { %v1762_v48 = vmul.f32 0.03125, %v1760_v63  ;;  %v1757_v2 = vpop.xlane.xlu1 %1756 }
 0x86f   :  { %v1761_v4 = vmul.f32 0.03125, %v1757_v2 }
 0x870   :  { %v1764_v5 = vadd.f32 1e-06, %v1762_v48 }
 0x871   :  { %v1763_v6 = vadd.f32 1e-06, %v1761_v4 }
 0x872   :  { %4451 = vrsqrt.f32 %v1764_v5 }
 0x873   :  { %4453 = vrsqrt.f32 %v1763_v6 }
 0x87c   :  { %v4452_v7 = vpop.eup %4451 }
 0x87d   :  { %v4454_v8 = vpop.eup %4453  ;;  %v1768_v10 = vmul.f32 %v4452_v7, %v4923_v42 }
 0x87e   :  { %v1767_v11 = vmul.f32 %v4454_v8, %v4926_v44 }
 0x87f   :  { %v1776_v14 = vmul.f32 %v3838_v9, %v1768_v10 }
 0x880   :  { %v1775_v12 = vmul.f32 %v3838_v9, %v1767_v11 }
 0x882   :  { %4146 = vmatprep.mubr.msk.f32.mxu1 %vm166_vm3, %v1775_v12 }
 0x883   :  { %4147 = vmatmul.mubr.msk.f32.vlgmr.msra.gmra.mrb[22].mxu1 %vm166_vm3, %v1776_v14 }
 0x884   :  { %4359 = vmatpush3.bf16.msra.mxu1 %v4356_v38 }
 0x885   :  { %4361 = vmatprep.subr.bf16.mxu1 %v4360_v40 }
 0x888   :  { %4363 = vmatpush3.bf16.msra.mxu1 %v4360_v40 }
 0x889   :  { %4179 = vmatprep.subr.mxu1 %v4524_v15 }
 0x956   :  { %v4148_v19 = vpop.f32.mrb[22].mxu1 }
 0x957   :  { %v1853_v21 = vpop.f32.mrb[23].mxu1  ;;  %v1863_v25 = vmax.f32 %v4148_v19, 0.0 }
 0x958   :  { %v1862_v24 = vmax.f32 %v1853_v21, 0.0 }
 0x95a   :  { %4165 = vmatprep.mubr.msk.f32.mxu0 %vm81_vm0, %v1862_v24 }
 0x95b   :  { %4166 = vmatmul.mubr.msk.f32.vlgmr.msra.gmra.mrb[16].mxu0 %vm81_vm0, %v1863_v25 }
 0x95c   :  { %4191 = vmatprep.mubr.msk.f32.mxu0 %vm4525_vm4, %v4524_v15 }
 0xa2e   :  { %v4167_v26 = vpop.f32.mrb[16].mxu0 }
 0xa2f   :  { %v4983_v27 = vadd.f32 %v4167_v26, %v4923_v42  ;;  %v1944_v29 = vpop.f32.mrb[17].mxu0 }
 0xa30   :  { %v4986_v30 = vadd.f32 %v1944_v29, %v4926_v44 }
 0xa31   :  { %v1957_v31 = vmul.f32 %v4983_v27, %v4983_v27 }
 0xa32   :  { %v1956_v32 = vmul.f32 %v4986_v30, %v4986_v30 }
 0xa33   :  { %v1961_v33 = vsel %vm166_vm3, %v1957_v31, 0.0 }
 0xa34   :  { %1962 = vadd.xlane.f32.xlu1 %v1961_v33  ;;  %v1958_v34 = vsel %vm166_vm3, %v1956_v32, 0.0 }
 0xa35   :  { %1959 = vadd.xlane.f32.xlu0 %v1958_v34 }
 0xac1   :  { %v1963_v41 = vpop.xlane.xlu1 %1962 }
 0xac2   :  { %v1965_v42 = vmul.f32 0.03125, %v1963_v41  ;;  %v1960_v43 = vpop.xlane.xlu0 %1959 }
 0xac3   :  { %v1964_v44 = vmul.f32 0.03125, %v1960_v43 }
 0xac4   :  { %v1967_v47 = vadd.f32 1e-06, %v1965_v42 }
 0xac5   :  { %v1966_v45 = vadd.f32 1e-06, %v1964_v44 }
 0xac6   :  { %4455 = vrsqrt.f32 %v1967_v47 }
 0xac7   :  { %4457 = vrsqrt.f32 %v1966_v45 }
 0xad0   :  { %v4456_v46 = vpop.eup %4455 }
 0xad1   :  { %v4458_v49 = vpop.eup %4457  ;;  %v1971_v23 = vmul.f32 %v4456_v46, %v4983_v27 }
 0xad2   :  { %v1970_v50 = vmul.f32 %v4458_v49, %v4986_v30 }
 0xad3   :  { %v1979_v52 = vmul.f32 %v3843_v22, %v1971_v23 }
 0xad4   :  { %v1978_v51 = vmul.f32 %v3843_v22, %v1970_v50 }
 0xad6   :  { %4176 = vmatprep.mubr.msk.f32.mxu1 %vm166_vm3, %v1978_v51 }
 0xad7   :  { %4177 = vmatmul.mubr.msk.f32.vlgmr.msra.gmra.mrb[24].mxu1 %vm166_vm3, %v1979_v52 }
 0xad8   :  { %4181 = vmatprep.mubr.msk.f32.mxu1 %vm4525_vm4, %v4524_v15 }
 0xbaa   :  { %v5016_v53 = vpop.f32.mrb[24].mxu1 }
 0xbab   :  { %v5018_v54 = vpop.f32.mrb[25].mxu1 }
 0xbac   :  { %2242 = vrot.lane.b32.xlu1 %v5018_v54, %s4526_s5  ;;  %2068 = vrot.lane.b32.xlu0 %v5018_v54, %s4527_s6 }
 0xbb0   :  { %2240 = vrot.lane.b32.xlu1 %v5018_v54, %s4529_s25  ;;  %2414 = vrot.lane.b32.xlu0 %v5018_v54, %s4530_s27 }
 0xbb4   :  { %2412 = vrot.lane.b32.xlu1 %v5018_v54, %s4531_s28  ;;  %2586 = vrot.lane.b32.xlu0 %v5018_v54, %s4532_s26 }
 0xbb8   :  { %2584 = vrot.lane.b32.xlu1 %v5018_v54, %s4528_s24  ;;  %2758 = vrot.lane.b32.xlu0 %v5016_v53, %s4527_s6 }
 0xbbc   :  { %2932 = vrot.lane.b32.xlu1 %v5016_v53, %s4526_s5  ;;  %2930 = vrot.lane.b32.xlu0 %v5016_v53, %s4529_s25 }
 0xbc0   :  { %3104 = vrot.lane.b32.xlu1 %v5016_v53, %s4530_s27  ;;  %3102 = vrot.lane.b32.xlu0 %v5016_v53, %s4531_s28 }
 0xbc4   :  { %3276 = vrot.lane.b32.xlu1 %v5016_v53, %s4532_s26  ;;  %3274 = vrot.lane.b32.xlu0 %v5016_v53, %s4528_s24  ;;  %s5321_s26 = sld [smem:[#allocation8_spill]] }
 0xbc8   :  { %2162 = vrot.lane.b32.xlu1 %v5018_v54, %s4533_s29 }
 0xc1e   :  { %v2243_v55 = vpop.permute.xlu1 %2242  ;;  %v2069_v56 = vpop.permute.xlu0 %2068 }
 0xc1f   :  { %4180 = vmatpush3.xpose.msk.msra.mxu1 %vm280_vm5, %v2069_v56  ;;  %4190 = vmatpush3.xpose.msk.msra.mxu0 %vm280_vm5, %v2243_v55 }
 0xc20   :  { %4199 = vmatprep.subr.mxu0 %v4524_v15  ;;  %4184 = vmatprep.subr.mxu1 %v4524_v15 }
 0xc22   :  { %v2241_v57 = vpop.permute.xlu1 %2240  ;;  %4182 = vmatmul.mubr.msk.f32.vlgmr.msra.gmra.mrb[26].mxu1 %vm280_vm5, %v5018_v54  ;;  %v2415_v58 = vpop.permute.xlu0 %2414 }
 0xc23   :  { %4192 = vmatmul.mubr.msk.f32.vlgmr.msra.gmra.mrb[18].mxu0 %vm280_vm5, %v2241_v57  ;;  %4186 = vmatprep.mubr.msk.f32.mxu1 %vm4525_vm4, %v4524_v15 }
 0xc24   :  { %4200 = vmatpush3.xpose.msk.msra.mxu0 %vm280_vm5, %v2415_v58  ;;  %4201 = vmatprep.mubr.msk.f32.mxu0 %vm4525_vm4, %v4524_v15 }
 0xc25   :  { %4209 = vmatprep.subr.mxu0 %v4524_v15 }
 0xc26   :  { %v2413_v59 = vpop.permute.xlu1 %2412  ;;  %v2587_v60 = vpop.permute.xlu0 %2586 }
 0xc27   :  { %4202 = vmatmul.mubr.msk.f32.vlgmr.msra.gmra.mrb[20].mxu0 %vm280_vm5, %v2413_v59 }
 0xc28   :  { %4210 = vmatpush3.xpose.msk.msra.mxu0 %vm280_vm5, %v2587_v60  ;;  %4211 = vmatprep.mubr.msk.f32.mxu0 %vm4525_vm4, %v4524_v15 }
 0xc29   :  { %4219 = vmatprep.subr.mxu0 %v4524_v15 }
 0xc2a   :  { %v2585_v61 = vpop.permute.xlu1 %2584  ;;  %v2759_v62 = vpop.permute.xlu0 %2758 }
 0xc2b   :  { %4212 = vmatmul.mubr.msk.f32.vlgmr.msra.gmra.mrb[22].mxu0 %vm280_vm5, %v2585_v61 }
 0xc2c   :  { %4220 = vmatpush3.xpose.msk.msra.mxu0 %vm280_vm5, %v2759_v62  ;;  %4221 = vmatprep.mubr.msk.f32.mxu0 %vm4525_vm4, %v4524_v15 }
 0xc2d   :  { %4229 = vmatprep.subr.mxu0 %v4524_v15 }
 0xc2e   :  { %v2933_v63 = vpop.permute.xlu1 %2932  ;;  %v2931_v48 = vpop.permute.xlu0 %2930 }
 0xc2f   :  { %4222 = vmatmul.mubr.msk.f32.vlgmr.msra.gmra.mrb[24].mxu0 %vm280_vm5, %v5016_v53 }
 0xc30   :  { %4230 = vmatpush3.xpose.msk.msra.mxu0 %vm280_vm5, %v2933_v63  ;;  %4231 = vmatprep.mubr.msk.f32.mxu0 %vm4525_vm4, %v4524_v15 }
 0xc31   :  { %4239 = vmatprep.subr.mxu0 %v4524_v15 }
 0xc32   :  { %v3105_v2 = vpop.permute.xlu1 %3104  ;;  %v3103_v4 = vpop.permute.xlu0 %3102 }
 0xc33   :  { %4232 = vmatmul.mubr.msk.f32.vlgmr.msra.gmra.mrb[26].mxu0 %vm280_vm5, %v2931_v48 }
 0xc34   :  { %4240 = vmatpush3.xpose.msk.msra.mxu0 %vm280_vm5, %v3105_v2  ;;  %4241 = vmatprep.mubr.msk.f32.mxu0 %vm4525_vm4, %v4524_v15 }
 0xc35   :  { %4249 = vmatprep.subr.mxu0 %v4524_v15 }
 0xc36   :  { %v3277_v5 = vpop.permute.xlu1 %3276  ;;  %v3275_v6 = vpop.permute.xlu0 %3274 }
 0xc37   :  { %4242 = vmatmul.mubr.msk.f32.vlgmr.msra.gmra.mrb[28].mxu0 %vm280_vm5, %v3103_v4 }
 0xc38   :  { %4250 = vmatpush3.xpose.msk.msra.mxu0 %vm280_vm5, %v3277_v5  ;;  %4251 = vmatprep.mubr.msk.f32.mxu0 %vm4525_vm4, %v4524_v15 }
 0xc3a   :  { %v2163_v7 = vpop.permute.xlu1 %2162 }
 0xc3b   :  { %4185 = vmatpush3.msra.mxu1 %v2163_v7  ;;  %4252 = vmatmul.mubr.msk.f32.vlgmr.msra.gmra.mrb[30].mxu0 %vm280_vm5, %v3275_v6 }
 0xc3c   :  { %4194 = vmatprep.subr.mxu1 %v4524_v15 }
 0xcf5   :  { %v2140_v8 = vpop.f32.mrb[26].mxu1 }
 0xcf6   :  { %v2141_v9 = vadd.f32 %v2140_v8, %v4777_v0  ;;  %v4183_v10 = vpop.f32.mrb[27].mxu1  ;;  %v2314_v11 = vpop.f32.mrb[18].mxu0 }
 0xcf7   :  { %v2315_v12 = vadd.f32 %v4782_v1, %v2314_v11  ;;  %v4193_v14 = vpop.f32.mrb[19].mxu0 }
 0xcf8   :  { %v2150_v16 = vadd.f32 %v4787_v3, %v2141_v9 }
 0xcf9   :  { %v2318_v17 = vadd.f32 %v4787_v3, %v2315_v12 }
 0xcfa   :  { %v2486_v18 = vpop.f32.mrb[20].mxu0  ;;  %v2151_v19 = vsel %vm280_vm5, %v2150_v16, -inf }
 0xcfb   :  { %v2487_v21 = vadd.f32 %v4798_v13, %v2486_v18  ;;  %2152 = vmax.xlane.f32.xlu1 %v2151_v19  ;;  %v4203_v24 = vpop.f32.mrb[21].mxu0  ;;  %v2319_v25 = vsel %vm280_vm5, %v2318_v17, -inf }
 0xcfc   :  { %2320 = vmax.xlane.f32.xlu0 %v2319_v25 }
 0xcfd   :  { %v2490_v26 = vadd.f32 %v4787_v3, %v2487_v21 }
 0xcfe   :  { %v2658_v29 = vpop.f32.mrb[22].mxu0 }
 0xcff   :  { %v2659_v31 = vadd.f32 %v4806_v20, %v2658_v29  ;;  %v4213_v32 = vpop.f32.mrb[23].mxu0  ;;  %v2491_v33 = vsel %vm280_vm5, %v2490_v26, -inf }
 0xd00   :  { %2492 = vmax.xlane.f32.xlu0 %v2491_v33 }
 0xd01   :  { %v2662_v34 = vadd.f32 %v4787_v3, %v2659_v31 }
 0xd02   :  { %v2830_v35 = vpop.f32.mrb[24].mxu0 }
 0xd03   :  { %v2831_v36 = vadd.f32 %v2830_v35, %v4777_v0  ;;  %v4223_v37 = vpop.f32.mrb[25].mxu0  ;;  %v2663_v38 = vsel %vm280_vm5, %v2662_v34, -inf }
 0xd04   :  { %2664 = vmax.xlane.f32.xlu1 %v2663_v38 }
 0xd05   :  { %v2840_v39 = vadd.f32 %v4813_v28, %v2831_v36 }
 0xd06   :  { %v3004_v40 = vpop.f32.mrb[26].mxu0 }
 0xd07   :  { %v3005_v41 = vadd.f32 %v4782_v1, %v3004_v40  ;;  %v4233_v42 = vpop.f32.mrb[27].mxu0  ;;  %v2841_v43 = vsel %vm280_vm5, %v2840_v39, -inf }
 0xd08   :  { %2842 = vmax.xlane.f32.xlu0 %v2841_v43 }
 0xd09   :  { %v3008_v44 = vadd.f32 %v4813_v28, %v3005_v41 }
 0xd0a   :  { %v3176_v47 = vpop.f32.mrb[28].mxu0 }
 0xd0b   :  { %v3177_v3 = vadd.f32 %v4798_v13, %v3176_v47  ;;  %v4243_v45 = vpop.f32.mrb[29].mxu0  ;;  %v3009_v0 = vsel %vm280_vm5, %v3008_v44, -inf }
 0xd0c   :  { %3010 = vmax.xlane.f32.xlu1 %v3009_v0 }
 0xd0d   :  { %v3180_v46 = vadd.f32 %v4813_v28, %v3177_v3 }
 0xd0e   :  { %v3348_v49 = vpop.f32.mrb[30].mxu0 }
 0xd0f   :  { %v4253_v22 = vpop.f32.mrb[31].mxu0  ;;  %v3181_v23 = vsel %vm280_vm5, %v3180_v46, -inf  ;;  %v3349_v1 = vadd.f32 %v4806_v20, %v3348_v49 }
 0xd10   :  { %3182 = vmax.xlane.f32.xlu0 %v3181_v23 }
 0xd11   :  { %v3352_v13 = vadd.f32 %v4813_v28, %v3349_v1 }
 0xd13   :  { %v3353_v50 = vsel %vm280_vm5, %v3352_v13, -inf }
 0xd1d   :  { %2502 = vrot.lane.b32.xlu1 %v5018_v54, %s4534_s2 }
 0xd26   :  { %2330 = vrot.lane.b32.xlu0 %v5018_v54, %s5319_s11 }
 0xd41   :  { %3354 = vmax.xlane.f32.xlu1 %v3353_v50 }
 0xd52   :  { %2674 = vrot.lane.b32.xlu1 %v5018_v54, %s5320_s12 }
 0xd88   :  { %v2153_v51 = vpop.xlane.xlu1 %2152 }
 0xd89   :  { %v2154_v52 = vsub.f32 %v2150_v16, %v2153_v51  ;;  %v2321_v55 = vpop.xlane.xlu0 %2320 }
 0xd8a   :  { %v2322_v56 = vsub.f32 %v2318_v17, %v2321_v55 }
 0xd8b   :  { %v2155_v57 = vmul.f32 1.442695, %v2154_v52 }
 0xd8c   :  { %v2323_v58 = vmul.f32 1.442695, %v2322_v56 }
 0xd8d   :  { %4459 = vpow2.f32 %v2155_v57  ;;  %v2493_v59 = vpop.xlane.xlu0 %2492 }
 0xd8e   :  { %4461 = vpow2.f32 %v2323_v58  ;;  %v2494_v60 = vsub.f32 %v2490_v26, %v2493_v59 }
 0xd90   :  { %v2495_v61 = vmul.f32 1.442695, %v2494_v60 }
 0xd91   :  { %v2665_v2 = vpop.xlane.xlu1 %2664 }
 0xd92   :  { %4463 = vpow2.f32 %v2495_v61  ;;  %v2666_v4 = vsub.f32 %v2662_v34, %v2665_v2 }
 0xd94   :  { %v2667_v8 = vmul.f32 1.442695, %v2666_v4 }
 0xd95   :  { %v2843_v5 = vpop.xlane.xlu0 %2842 }
 0xd96   :  { %v2844_v7 = vsub.f32 %v2840_v39, %v2843_v5  ;;  %4465 = vpow2.f32 %v2667_v8 }
 0xd97   :  { %v4460_v20 = vpop.eup %4459 }
 0xd98   :  { %v4462_v28 = vpop.eup %4461  ;;  %v2157_v62 = vsel %vm280_vm5, %v4460_v20, 0.0  ;;  %v2845_v11 = vmul.f32 1.442695, %v2844_v7 }
 0xd99   :  { %2158 = vadd.xlane.f32.xlu0 %v2157_v62  ;;  %v2325_v63 = vsel %vm280_vm5, %v4462_v28, 0.0  ;;  %v3011_v6 = vpop.xlane.xlu1 %3010 }
 0xd9a   :  { %2326 = vadd.xlane.f32.xlu1 %v2325_v63  ;;  %v3012_v9 = vsub.f32 %v3008_v44, %v3011_v6  ;;  %4467 = vpow2.f32 %v2845_v11  ;;  %v3448_v6 = vld [vmem:[%s5303_s13 + $0x8] sm:$0xff] }
 0xd9c   :  { %v5122_v54 = vpop.eup %4463  ;;  %v3013_v12 = vmul.f32 1.442695, %v3012_v9  ;;  %v3449_v9 = vld [vmem:[%s5303_s13 + $0x10] sm:$0xff] }
 0xd9d   :  { %v2497_v48 = vsel %vm280_vm5, %v5122_v54, 0.0  ;;  %v3183_v10 = vpop.xlane.xlu0 %3182  ;;  %v2503_v17 = vpop.permute.xlu1 %2502 }
 0xd9e   :  { %2498 = vadd.xlane.f32.xlu0 %v2497_v48  ;;  %v3184_v14 = vsub.f32 %v3180_v46, %v3183_v10  ;;  %4469 = vpow2.f32 %v3013_v12  ;;  %v3450_v10 = vld [vmem:[%s5303_s13 + $0x18] sm:$0xff] }
 0xd9f   :  { %v4368_v12 = vpack.c.bf16 %v3450_v10, %v3449_v9 }
 0xda0   :  { %v3185_v16 = vmul.f32 1.442695, %v3184_v14  ;;  %v4466_v18 = vpop.eup %4465 }
 0xda1   :  { %v2669_v24 = vsel %vm280_vm5, %v4466_v18, 0.0  ;;  %v2331_v37 = vpop.permute.xlu0 %2330 }
 0xda2   :  { %4471 = vpow2.f32 %v3185_v16 }
 0xda4   :  { %v5130_v19 = vpop.eup %4467 }
 0xda5   :  { %v2847_v32 = vsel %vm280_vm5, %v5130_v19, 0.0 }
 0xda8   :  { %v5133_v25 = vpop.eup %4469 }
 0xda9   :  { %v3015_v31 = vsel %vm280_vm5, %v5133_v25, 0.0 }
 0xdab   :  { %2852 = vrot.lane.b32.xlu1 %v5016_v53, %s4533_s29  ;;  %s4540_s29 = smov [#allocation3]  }
 0xdac   :  { %v5139_v33 = vpop.eup %4471 }
 0xdad   :  { %v3187_v34 = vsel %vm280_vm5, %v5139_v33, 0.0 }
 0xdb4   :  { %3020 = vrot.lane.b32.xlu0 %v5016_v53, %s5319_s11 }
 0xdce   :  { %v3355_v21 = vpop.xlane.xlu1 %3354 }
 0xdcf   :  { %v3356_v26 = vsub.f32 %v3352_v13, %v3355_v21  ;;  %2670 = vadd.xlane.f32.xlu1 %v2669_v24 }
 0xdd1   :  { %v3357_v29 = vmul.f32 1.442695, %v3356_v26 }
 0xdd2   :  { %v2675_v38 = vpop.permute.xlu1 %2674 }
 0xdd3   :  { %4473 = vpow2.f32 %v3357_v29  ;;  %3016 = vadd.xlane.f32.xlu1 %v3015_v31  ;;  %2848 = vadd.xlane.f32.xlu0 %v2847_v32 }
 0xdd7   :  { %3188 = vadd.xlane.f32.xlu0 %v3187_v34 }
 0xddd   :  { %v5143_v35 = vpop.eup %4473 }
 0xdde   :  { %v3359_v36 = vsel %vm280_vm5, %v5143_v35, 0.0 }
 0xddf   :  { %3360 = vadd.xlane.f32.xlu0 %v3359_v36 }
 0xde4   :  { %3192 = vrot.lane.b32.xlu1 %v5016_v53, %s4534_s2 }
 0xdf5   :  { %3364 = vrot.lane.b32.xlu0 %v5016_v53, %s5320_s12 }
 0xe26   :  { %v2159_v39 = vpop.xlane.xlu0 %2158 }
 0xe27   :  { %4475 = vrcp.f32 %v2159_v39  ;;  %v2327_v40 = vpop.xlane.xlu1 %2326 }
 0xe28   :  { %4477 = vrcp.f32 %v2327_v40 }
 0xe2b   :  { %v2499_v41 = vpop.xlane.xlu0 %2498  ;;  %v2853_v45 = vpop.permute.xlu1 %2852 }
 0xe2c   :  { %4479 = vrcp.f32 %v2499_v41 }
 0xe2f   :  { %v3021_v0 = vpop.permute.xlu0 %3020 }
 0xe31   :  { %v4476_v42 = vpop.eup %4475 }
 0xe32   :  { %v2161_v43 = vmul.f32 %v4476_v42, %v4460_v20  ;;  %v4478_v44 = vpop.eup %4477 }
 0xe33   :  { %v2329_v47 = vmul.f32 %v4478_v44, %v4462_v28 }
 0xe34   :  { %4187 = vmatmul.mubr.msk.f32.vlgmr.msra.gmra.mrb[28].mxu1 %vm280_vm5, %v2161_v43  ;;  %v3561_v43 = vld [vmem:[%s5305_s15 + $0x10] sm:$0xff] }
 0xe35   :  { %4195 = vmatpush3.msra.mxu1 %v2331_v37  ;;  %4196 = vmatprep.mubr.msk.f32.mxu1 %vm4525_vm4, %v4524_v15 }
 0xe36   :  { %4204 = vmatprep.subr.mxu1 %v4524_v15  ;;  %v4480_v53 = vpop.eup %4479 }
 0xe37   :  { %v2501_v3 = vmul.f32 %v4480_v53, %v5122_v54 }
 0xe38   :  { %4197 = vmatmul.mubr.msk.f32.vlgmr.msra.gmra.mrb[30].mxu1 %vm280_vm5, %v2329_v47  ;;  %v3562_v47 = vld [vmem:[%s5305_s15 + $0x18] sm:$0xff] }
 0xe39   :  { %4205 = vmatpush3.msra.mxu1 %v2503_v17  ;;  %4206 = vmatprep.mubr.msk.f32.mxu1 %vm4525_vm4, %v4524_v15  ;;  %v4376_v53 = vpack.c.bf16 %v3562_v47, %v3561_v43 }
 0xe3a   :  { %4214 = vmatprep.subr.mxu1 %v4524_v15 }
 0xe3c   :  { %4207 = vmatmul.mubr.msk.f32.vlgmr.msra.gmra.mrb[32].mxu1 %vm280_vm5, %v2501_v3  ;;  %v3646_v3 = vld [vmem:[%s5306_s16] sm:$0xff] }
 0xe3d   :  { %4215 = vmatpush3.msra.mxu1 %v2675_v38  ;;  %4216 = vmatprep.mubr.msk.f32.mxu1 %vm4525_vm4, %v4524_v15 }
 0xe3e   :  { %4224 = vmatprep.subr.mxu1 %v4524_v15 }
 0xe5c   :  { %v2671_v46 = vpop.xlane.xlu1 %2670 }
 0xe5d   :  { %4481 = vrcp.f32 %v2671_v46 }
 0xe60   :  { %v2849_v49 = vpop.xlane.xlu0 %2848  ;;  %v3017_v22 = vpop.xlane.xlu1 %3016 }
 0xe61   :  { %4483 = vrcp.f32 %v2849_v49  ;;  %v3649_v49 = vld [vmem:[%s5306_s16 + $0x18] sm:$0xff] }
 0xe62   :  { %4485 = vrcp.f32 %v3017_v22 }
 0xe64   :  { %v3189_v23 = vpop.xlane.xlu0 %3188  ;;  %v3193_v58 = vpop.permute.xlu1 %3192 }
 0xe65   :  { %4487 = vrcp.f32 %v3189_v23  ;;  %v3650_v23 = vld [vmem:[%s5306_s16 + $0x20] sm:$0xff] }
 0xe67   :  { %v4482_v1 = vpop.eup %4481 }
 0xe68   :  { %v2673_v13 = vmul.f32 %v4482_v1, %v4466_v18  ;;  %v3651_v1 = vld [vmem:[%s5306_s16 + $0x28] sm:$0xff] }
 0xe6a   :  { %4217 = vmatmul.mubr.msk.f32.vlgmr.msra.gmra.mrb[34].mxu1 %vm280_vm5, %v2673_v13  ;;  %v4388_v13 = vpack.c.bf16 %v3651_v1, %v3650_v23 }
 0xe6b   :  { %4225 = vmatpush3.msra.mxu1 %v2853_v45  ;;  %4226 = vmatprep.mubr.msk.f32.mxu1 %vm4525_vm4, %v4524_v15  ;;  %v4484_v50 = vpop.eup %4483  ;;  %v3647_v45 = vld [vmem:[%s5306_s16 + $0x8] sm:$0xff] }
 0xe6c   :  { %v3361_v51 = vpop.xlane.xlu0 %3360  ;;  %4234 = vmatprep.subr.mxu1 %v4524_v15  ;;  %v2851_v52 = vmul.f32 %v4484_v50, %v5130_v19  ;;  %v4486_v55 = vpop.eup %4485  ;;  %v4380_v46 = vpack.c.bf16 %v3647_v45, %v3646_v3 }
 0xe6d   :  { %4489 = vrcp.f32 %v3361_v51  ;;  %v3019_v56 = vmul.f32 %v4486_v55, %v5133_v25 }
 0xe6e   :  { %4227 = vmatmul.mubr.msk.f32.vlgmr.msra.gmra.mrb[36].mxu1 %vm280_vm5, %v2851_v52 }
 0xe6f   :  { %4235 = vmatpush3.msra.mxu1 %v3021_v0  ;;  %4236 = vmatprep.mubr.msk.f32.mxu1 %vm4525_vm4, %v4524_v15  ;;  %v4488_v57 = vpop.eup %4487  ;;  %v3648_v0 = vld [vmem:[%s5306_s16 + $0x10] sm:$0xff] }
 0xe70   :  { %4244 = vmatprep.subr.mxu1 %v4524_v15  ;;  %v3191_v59 = vmul.f32 %v4488_v57, %v5139_v33  ;;  %v3365_v61 = vpop.permute.xlu0 %3364  ;;  %v4384_v22 = vpack.c.bf16 %v3649_v49, %v3648_v0 }
 0xe72   :  { %4237 = vmatmul.mubr.msk.f32.vlgmr.msra.gmra.mrb[38].mxu1 %vm280_vm5, %v3019_v56 }
 0xe73   :  { %4245 = vmatpush3.msra.mxu1 %v3193_v58  ;;  %4246 = vmatprep.mubr.msk.f32.mxu1 %vm4525_vm4, %v4524_v15 }
 0xe74   :  { %4254 = vmatprep.subr.mxu1 %v4524_v15 }
 0xe76   :  { %4247 = vmatmul.mubr.msk.f32.vlgmr.msra.gmra.mrb[40].mxu1 %vm280_vm5, %v3191_v59 }
 0xe77   :  { %v4490_v60 = vpop.eup %4489  ;;  %4255 = vmatpush3.msra.mxu1 %v3365_v61  ;;  %4256 = vmatprep.mubr.msk.f32.mxu1 %vm4525_vm4, %v4524_v15  ;;  %v3447_v15 = vld [vmem:[%s5303_s13] sm:$0xff]  ;;  %s3788_s13 = sshll.u32 %s4540_s29, 4  ;;  %s3789_s13 = int_to_ptr.vmem [resolvable:$true] %s3788_s13 }
 0xe78   :  { %v3363_v20 = vmul.f32 %v4490_v60, %v5143_v35  ;;  %v4364_v7 = vpack.c.bf16 %v3448_v6, %v3447_v15  ;;  %v3881_v60 = vld [vmem:[%s5304_s14] ss:$0 sm:$0xff]  ;;  %s4499_s2 = scalar_lea.vmem %s3789_s13, 32  ;;  %p4504_p1 = scmp.lt.s32.totalorder %s3789_s13, %s3789_s13 }
 0xe79   :  { %p4500_p0 = scmp.ne.s32.totalorder %s3789_s13, %s4499_s2  ;;  %p4505_p2 = scmp.lt.s32.totalorder %s4499_s2, %s4499_s2 }
 0xe7a   :  { %4257 = vmatmul.mubr.msk.f32.vlgmr.msra.gmra.mrb[42].mxu1 %vm280_vm5, %v3363_v20  ;;  %4365 = vmatprep.subr.bf16.mxu0 %v4364_v7 }
 0xe7b   :  { %4367 = vmatpush3.bf16.msra.mxu0 %v4364_v7  ;;  %p4506_p3 = por %p4505_p2, %p4504_p1 }
 0xe7c   :  { %4369 = vmatprep.subr.bf16.mxu0 %v4368_v12 }
 0xe7d   :  { %p4507_p4 = pnand %p4506_p3, %p4500_p0 }
 0xe7f   :  { %4371 = vmatpush3.bf16.msra.mxu0 %v4368_v12 }
 0xe80   :  { %4381 = vmatprep.subr.bf16.mxu0 %v4380_v46 }
 0xf07   :  { %v2234_v28 = vpop.f32.mrb[28].mxu1 }
 0xf08   :  { %2238 = vst.msk [vmem:[#allocation2] sm:$0xff] %vm280_vm5, %v2234_v28  ;;  %v4188_v62 = vpop.f32.mrb[29].mxu1 }
 0xf0b   :  { %v2402_v63 = vpop.f32.mrb[30].mxu1 }
 0xf0c   :  { %2407 = vrot.lane.b32.xlu1 %v2402_v63, %s4537_s18  ;;  %v4198_v54 = vpop.f32.mrb[31].mxu1  ;;  %v3652_v63 = vld [vmem:[%s5306_s16 + $0x30] sm:$0xff] }
 0xf0d   :  { %v3653_v54 = vld [vmem:[%s5306_s16 + $0x38] sm:$0xff] }
 0xf0f   :  { %v2574_v48 = vpop.f32.mrb[32].mxu1 }
 0xf10   :  { %2579 = vrot.lane.b32.xlu0 %v2574_v48, %s4538_s19  ;;  %v4208_v2 = vpop.f32.mrb[33].mxu1  ;;  %v4392_v48 = vpack.c.bf16 %v3653_v54, %v3652_v63 }
 0xf3d   :  { %v2746_v4 = vpop.f32.mrb[34].mxu1 }
 0xf3e   :  { %2751 = vrot.lane.b32.xlu0 %v2746_v4, %s4539_s1  ;;  %v4218_v5 = vpop.f32.mrb[35].mxu1 }
 0xf41   :  { %v2924_v8 = vpop.f32.mrb[36].mxu1 }
 0xf42   :  { %2928 = vst.msk [vmem:[#allocation2 + $0x8] sm:$0xff] %vm280_vm5, %v2924_v8  ;;  %v4228_v11 = vpop.f32.mrb[37].mxu1 }
 0xf45   :  { %v3092_v14 = vpop.f32.mrb[38].mxu1 }
 0xf46   :  { %3097 = vrot.lane.b32.xlu1 %v3092_v14, %s4537_s18  ;;  %v4238_v16 = vpop.f32.mrb[39].mxu1 }
 0xf49   :  { %v3264_v17 = vpop.f32.mrb[40].mxu1 }
 0xf4a   :  { %3269 = vrot.lane.b32.xlu1 %v3264_v17, %s4538_s19  ;;  %v4248_v18 = vpop.f32.mrb[41].mxu1 }
 0xf4d   :  { %v3436_v19 = vpop.f32.mrb[42].mxu1 }
 0xf4e   :  { %3441 = vrot.lane.b32.xlu0 %v3436_v19, %s4539_s1  ;;  %v4258_v21 = vpop.f32.mrb[43].mxu1 }
 0xf7e   :  { %v2408_v24 = vpop.permute.xlu1 %2407 }
 0xf7f   :  { %2410 = vst.msk [vmem:[#allocation2] sm:$0xff] %vm622_vm6, %v2408_v24 }
 0xf82   :  { %v2580_v25 = vpop.permute.xlu0 %2579 }
 0xf83   :  { %2582 = vst.msk [vmem:[#allocation2] sm:$0xff] %vm796_vm7, %v2580_v25 }
 0xfb0   :  { %v2752_v26 = vpop.permute.xlu0 %2751 }
 0xfb1   :  { %2754 = vst.msk [vmem:[#allocation2] sm:$0xff] %vm970_vm8, %v2752_v26  ;;  %v3886_v26 = vld [vmem:[%s5321_s26] ss:$0 sm:$0xff] }
 0xfb8   :  { %v3445_v29 = vld [vmem:[#allocation2] sm:$0xff]  ;;  %v3098_v31 = vpop.permute.xlu1 %3097 }
 0xfb9   :  { %4267 = vmatprep.mubr.msk.f32.mxu0 %vm166_vm3, %v3445_v29  ;;  %3100 = vst.msk [vmem:[#allocation2 + $0x8] sm:$0xff] %vm622_vm6, %v3098_v31 }
 0xfbc   :  { %v3270_v32 = vpop.permute.xlu1 %3269 }
 0xfbd   :  { %3272 = vst.msk [vmem:[#allocation2 + $0x8] sm:$0xff] %vm796_vm7, %v3270_v32 }
 0xfc0   :  { %v3442_v33 = vpop.permute.xlu0 %3441 }
 0xfc1   :  { %3444 = vst.msk [vmem:[#allocation2 + $0x8] sm:$0xff] %vm970_vm8, %v3442_v33 }
 0xfc8   :  { %v3446_v34 = vld [vmem:[#allocation2 + $0x8] sm:$0xff] }
 0xfc9   :  { %4268 = vmatmul.mubr.msk.f32.vlgmr.msra.gmra.mrb[32].mxu0 %vm166_vm3, %v3446_v34 }
 0xfca   :  { %4383 = vmatpush3.bf16.msra.mxu0 %v4380_v46 }
 0xfcb   :  { %4385 = vmatprep.subr.bf16.mxu0 %v4384_v22 }
 0xfce   :  { %4387 = vmatpush3.bf16.msra.mxu0 %v4384_v22 }
 0xfcf   :  { %4389 = vmatprep.subr.bf16.mxu0 %v4388_v13 }
 0xfd2   :  { %4391 = vmatpush3.bf16.msra.mxu0 %v4388_v13 }
 0xfd3   :  { %4393 = vmatprep.subr.bf16.mxu0 %v4392_v48 }
 0xfd6   :  { %4395 = vmatpush3.bf16.msra.mxu0 %v4392_v48 }
0x109c   :  { %v4269_v35 = vpop.f32.mrb[32].mxu0 }
0x109d   :  { %v5213_v36 = vadd.f32 %v4269_v35, %v4983_v27  ;;  %v3523_v37 = vpop.f32.mrb[33].mxu0  ;;  %v3559_v27 = vld [vmem:[%s5305_s15] sm:$0xff] }
0x109e   :  { %v5216_v38 = vadd.f32 %v3523_v37, %v4986_v30  ;;  %v3560_v30 = vld [vmem:[%s5305_s15 + $0x8] sm:$0xff] }
0x109f   :  { %v3536_v39 = vmul.f32 %v5213_v36, %v5213_v36  ;;  %v4372_v44 = vpack.c.bf16 %v3560_v30, %v3559_v27 }
0x10a0   :  { %v3535_v40 = vmul.f32 %v5216_v38, %v5216_v38 }
0x10a1   :  { %v3540_v41 = vsel %vm166_vm3, %v3536_v39, 0.0  ;;  %4373 = vmatprep.subr.bf16.mxu1 %v4372_v44 }
0x10a2   :  { %3541 = vadd.xlane.f32.xlu0 %v3540_v41  ;;  %v3537_v42 = vsel %vm166_vm3, %v3535_v40, 0.0  ;;  %4375 = vmatpush3.bf16.msra.mxu1 %v4372_v44 }
0x10a3   :  { %3538 = vadd.xlane.f32.xlu1 %v3537_v42  ;;  %4377 = vmatprep.subr.bf16.mxu1 %v4376_v53 }
0x10a6   :  { %4379 = vmatpush3.bf16.msra.mxu1 %v4376_v53 }
0x112f   :  { %v3542_v50 = vpop.xlane.xlu0 %3541 }
0x1130   :  { %v3544_v51 = vmul.f32 0.03125, %v3542_v50  ;;  %v3539_v52 = vpop.xlane.xlu1 %3538 }
0x1131   :  { %v3543_v55 = vmul.f32 0.03125, %v3539_v52 }
0x1132   :  { %v3546_v56 = vadd.f32 1e-06, %v3544_v51 }
0x1133   :  { %v3545_v57 = vadd.f32 1e-06, %v3543_v55 }
0x1134   :  { %4491 = vrsqrt.f32 %v3546_v56 }
0x1135   :  { %4493 = vrsqrt.f32 %v3545_v57 }
0x113e   :  { %v4492_v58 = vpop.eup %4491 }
0x113f   :  { %v4494_v59 = vpop.eup %4493  ;;  %v3550_v61 = vmul.f32 %v4492_v58, %v5213_v36 }
0x1140   :  { %v3549_v20 = vmul.f32 %v4494_v59, %v5216_v38 }
0x1141   :  { %v3558_v62 = vmul.f32 %v3881_v60, %v3550_v61 }
0x1142   :  { %v3557_v28 = vmul.f32 %v3881_v60, %v3549_v20 }
0x1144   :  { %4278 = vmatprep.mubr.msk.f32.mxu1 %vm166_vm3, %v3557_v28 }
0x1145   :  { %4279 = vmatmul.mubr.msk.f32.vlgmr.msra.gmra.mrb[44].mxu1 %vm166_vm3, %v3558_v62 }
0x1218   :  { %v4280_v2 = vpop.f32.mrb[44].mxu1 }
0x1219   :  { %v3635_v4 = vpop.f32.mrb[45].mxu1  ;;  %v3645_v15 = vmax.f32 %v4280_v2, 0.0 }
0x121a   :  { %v3644_v5 = vmax.f32 %v3635_v4, 0.0 }
0x121c   :  { %4297 = vmatprep.mubr.msk.f32.mxu0 %vm81_vm0, %v3644_v5 }
0x121d   :  { %4298 = vmatmul.mubr.msk.f32.vlgmr.msra.gmra.mrb[34].mxu0 %vm81_vm0, %v3645_v15 }
0x12f0   :  { %v4299_v6 = vpop.f32.mrb[34].mxu0 }
0x12f1   :  { %v3736_v7 = vadd.f32 %v4299_v6, %v5213_v36  ;;  %v3726_v8 = vpop.f32.mrb[35].mxu0 }
0x12f2   :  { %v3735_v9 = vadd.f32 %v3726_v8, %v5216_v38 }
0x12f3   :  { %v3739_v10 = vmul.f32 %v3736_v7, %v3736_v7 }
0x12f4   :  { %v3738_v11 = vmul.f32 %v3735_v9, %v3735_v9 }
0x12f5   :  { %v3743_v12 = vsel %vm166_vm3, %v3739_v10, 0.0 }
0x12f6   :  { %3744 = vadd.xlane.f32.xlu1 %v3743_v12  ;;  %v3740_v14 = vsel %vm166_vm3, %v3738_v11, 0.0 }
0x12f7   :  { %3741 = vadd.xlane.f32.xlu0 %v3740_v14 }
0x1383   :  { %v3745_v16 = vpop.xlane.xlu1 %3744 }
0x1384   :  { %v3747_v17 = vmul.f32 0.03125, %v3745_v16  ;;  %v3742_v18 = vpop.xlane.xlu0 %3741 }
0x1385   :  { %v3746_v19 = vmul.f32 0.03125, %v3742_v18 }
0x1386   :  { %v3749_v21 = vadd.f32 1e-06, %v3747_v17 }
0x1387   :  { %v3748_v24 = vadd.f32 1e-06, %v3746_v19 }
0x1388   :  { %4495 = vrsqrt.f32 %v3749_v21 }
0x1389   :  { %4497 = vrsqrt.f32 %v3748_v24 }
0x1392   :  { %v4496_v25 = vpop.eup %4495 }
0x1393   :  { %v4498_v29 = vpop.eup %4497  ;;  %v3753_v31 = vmul.f32 %v4496_v25, %v3736_v7 }
0x1394   :  { %v3752_v32 = vmul.f32 %v4498_v29, %v3735_v9 }
0x1395   :  { %v3761_v33 = vmul.f32 %v3886_v26, %v3753_v31 }
0x1396   :  { %v3760_v34 = vmul.f32 %v3886_v26, %v3752_v32 }
0x1397   :  { %v3773_v35 = vsel %vm166_vm3, %v3761_v33, 0.0 }
0x1398   :  { %v3762_v36 = vsel %vm166_vm3, %v3760_v34, 0.0  ;;  %v3774_v37 = vrot.slane %v3773_v35, 4 }
0x1399   :  { %v3763_v38 = vrot.slane %v3762_v36, 4 }
0x139a   :  { %v3775_v39 = vadd.f32 %v3774_v37, %v3773_v35 }
0x139b   :  { %v3764_v40 = vadd.f32 %v3763_v38, %v3762_v36 }
0x139c   :  { %v3776_v41 = vrot.slane %v3775_v39, 2 }
0x139d   :  { %v3765_v42 = vrot.slane %v3764_v40, 2 }
0x139e   :  { %v3777_v27 = vadd.f32 %v3776_v41, %v3775_v39 }
0x139f   :  { %v3766_v30 = vadd.f32 %v3765_v42, %v3764_v40 }
0x13a0   :  { %v3778_v43 = vrot.slane %v3777_v27, 1 }
0x13a1   :  { %v3767_v44 = vrot.slane %v3766_v30, 1 }
0x13a2   :  { %v3779_v47 = vadd.f32 %v3778_v43, %v3777_v27 }
0x13a3   :  { %v3768_v53 = vadd.f32 %v3767_v44, %v3766_v30 }
0x13a4   :  { %v3780_v3 = vmul.f32 0.125, %v3779_v47 }
0x13a5   :  { %v3770_v45 = vmul.f32 0.125, %v3768_v53 }
0x13a6   :  { %3781 = vst.msk [vmem:[#allocation3 + $0x1] sm:$0x1] %vm3771_vm9, %v3780_v3 }
0x13a7   :  { %3772 = vst.msk [vmem:[#allocation3] sm:$0x1] %vm3771_vm9, %v3770_v45 }
0x13a8   :  { %4510 = shalt.err (!%p4507_p4)
}
0x13a9   :  { %s4511_s1 = scalar_lea.hbm %s5307_s17, 32 }
0x13aa   :  { %p4512_p5 = scmp.ne.s32.totalorder %s5307_s17, %s4511_s1  ;;  %p4515_p6 = scmp.lt.u32.totalorder %s4511_s1, %s5307_s17 }
0x13ac   :  { %p4517_p7 = pnand %p4515_p6, %p4512_p5 }
0x13ae   :  { %4520 = shalt.err (!%p4517_p7)
}
0x13af   :  { %3791 = dma.vmem_to_hbm [thread:$0]  %s3789_s13, 32, %s5307_s17, [#allocation4]  }
0x13b0   :  { %4521 = dma.done.wait [#allocation4], 32  }
0x13b1   :  { %4522 = vsyncadd [#allocation4], 4294967264 }
0x13b2   :  { %3795 = vsyncpa [#allocation4], 1 }

</bundles_post_ra>
